<compile_context>
chip_gen: v5e
topology: v5e:2x2
jax: 0.10.0
libtpu: 0.0.40
codegen_flags: <defaults>
</compile_context>

<pallas_src>
import numpy as np
import jax
import jax.numpy as jnp
from jax.experimental import pallas as pl
from jax.experimental.pallas import tpu as pltpu

# ----------------------------- configuration --------------------------------
POS_FEAT = 32                       # GridEncoder output: 16 levels * 2 dims
HIDDEN = 64                         # hidden_size
NORMAL_HIDDEN = 32                  # normal_hidden_size
NUM_LAYERS = 2                      # inner Linear+ReLU blocks in sigma_block
FUSED_H = HIDDEN + NORMAL_HIDDEN    # 96 : block-diagonal hidden width
FUSED_OUT = 4                       # [sigma, nx, ny, nz]
PTS_PAD = 8                         # points padded 3 -> 8 cols (zero-filled)
MAX_TM = 4096                       # max points per Pallas tile (row block)

# ----------------- GridEncoder (Instant-NGP hash grid), plain JAX -----------
# TODO(synk): GridEncoder internals are external to the given module; this is
# the standard Instant-NGP multiresolution hash grid in plain JAX (the
# data-dependent gather into a ~6M-entry table has no clean Pallas equivalent).
_PRIMES = np.array([1, 2654435761, 805459861], dtype=np.uint32)


def make_grid_encoder(key, num_levels=16, level_dim=2, log2_hashmap_size=19,
                      base_resolution=16, desired_resolution=2048, input_dim=3):
    per_level_scale = np.exp2(
        np.log2(desired_resolution / base_resolution) / (num_levels - 1))
    max_params = 2 ** log2_hashmap_size
    offsets, resolutions, scales = [0], [], []
    for lvl in range(num_levels):
        scale = base_resolution * per_level_scale ** lvl - 1.0
        res = int(np.ceil(scale)) + 1
        scales.append(float(scale))
        resolutions.append(res)
        n = min(max_params, res ** input_dim)
        n = int(np.ceil(n / 8) * 8)
        offsets.append(offsets[-1] + n)
    table = jax.random.uniform(key, (offsets[-1], level_dim), jnp.float32,
                               -1e-4, 1e-4)
    meta = dict(offsets=offsets, resolutions=resolutions, scales=scales,
                hashmap_size=max_params, num_levels=num_levels,
                level_dim=level_dim)
    return table, meta


def grid_encode(pts_flat, table, meta, out_dtype=jnp.float32):
    """pts_flat: (P, 3) in [0, 1] -> (P, num_levels*level_dim) features."""
    x = jnp.clip(pts_flat, 0.0, 1.0 - 1e-6)
    feats = []
    for lvl in range(meta['num_levels']):
        scale = meta['scales'][lvl]
        res = meta['resolutions'][lvl]
        level_size = meta['offsets'][lvl + 1] - meta['offsets'][lvl]
        pos = x * scale + 0.5
        pos_grid = jnp.floor(pos)
        frac = pos - pos_grid
        base = pos_grid.astype(jnp.uint32)                       # (P, 3)
        dense = (res ** 3) <= meta['hashmap_size']
        acc = jnp.zeros((x.shape[0], meta['level_dim']), jnp.float32)
        for c in range(8):
            bits = np.array([(c >> d) & 1 for d in range(3)], np.float32)
            corner = base + jnp.asarray(bits, jnp.uint32)
            w = jnp.prod(jnp.where(bits[None, :] > 0, frac, 1.0 - frac),
                         axis=-1, keepdims=True)                 # (P, 1)
            if dense:
                idx = (corner[:, 0]
                       + corner[:, 1] * jnp.uint32(res)
                       + corner[:, 2] * jnp.uint32(res * res))
            else:
                idx = ((corner[:, 0] * jnp.uint32(_PRIMES[0]))
                       ^ (corner[:, 1] * jnp.uint32(_PRIMES[1]))
                       ^ (corner[:, 2] * jnp.uint32(_PRIMES[2])))
            idx = (idx % jnp.uint32(level_size)).astype(jnp.int32)
            idx = idx + meta['offsets'][lvl]
            acc = acc + w * jnp.take(table, idx, axis=0)
        feats.append(acc)
    # Cast fuses into the final concat write (no extra HBM pass).
    return jnp.concatenate(feats, axis=-1).astype(out_dtype)     # (P, 32)


# ------------------------------ Pallas kernel --------------------------------
def geometry_kernel(h_ref, p_ref, w0h_ref, w0p_ref, wh_ref, w3_ref, out_ref):
    # Block-diagonal fused MLP.  Columns [0:HIDDEN] carry the sigma branch,
    # columns [HIDDEN:HIDDEN+NORMAL_HIDDEN] the normal branch; the off-diagonal
    # weight blocks are zero so the two branches never mix.
    # First fused layer = dot(h, w0h) + dot(pts, w0p) into one f32 accumulator
    # (exactly the block-diagonal layer, without a wrapper-side concat in HBM).
    y = jnp.dot(h_ref[...], w0h_ref[...],
                preferred_element_type=jnp.float32)               # (TM, 96)
    y = y + jnp.dot(p_ref[...], w0p_ref[...],
                    preferred_element_type=jnp.float32)
    y = jnp.maximum(y, 0.0).astype(jnp.bfloat16)
    for i in range(NUM_LAYERS):
        y = jnp.dot(y, wh_ref[i], preferred_element_type=jnp.float32)
        y = jnp.maximum(y, 0.0).astype(jnp.bfloat16)
    o = jnp.dot(y, w3_ref[...],
                preferred_element_type=jnp.float32)               # (TM, 4)

    # Column 0 -> softplus(sigma) (PyTorch semantics: linear above 20).
    # Columns 1:4 -> L2-normalized normal (== x / max(||x||, 1e-6)).
    col = jax.lax.broadcasted_iota(jnp.int32, o.shape, 1)
    is_sigma = col == 0
    sp = jnp.where(o > 20.0, o,
                   jnp.log(1.0 + jnp.exp(jnp.minimum(o, 20.0))))
    sumsq = jnp.sum(jnp.where(is_sigma, 0.0, o * o),
                    axis=-1, keepdims=True)                       # (TM, 1)
    inv = jax.lax.rsqrt(jnp.maximum(sumsq, 1e-12))
    out_ref[...] = jnp.where(is_sigma, sp, o * inv)


def pack_fused_weights(params):
    """Pack the two MLPs into block-diagonal bf16 weight matrices."""
    w0h = jnp.zeros((POS_FEAT, FUSED_H), jnp.float32)
    w0h = w0h.at[:, :HIDDEN].set(params['w_in'])                  # sigma branch

    w0p = jnp.zeros((PTS_PAD, FUSED_H), jnp.float32)
    w0p = w0p.at[:3, HIDDEN:].set(params['nw_in'])                # normal branch

    wh = jnp.zeros((NUM_LAYERS, FUSED_H, FUSED_H), jnp.float32)
    for i in range(NUM_LAYERS):
        wh = wh.at[i, :HIDDEN, :HIDDEN].set(params['w_hid'][i])
        wh = wh.at[i, HIDDEN:, HIDDEN:].set(params['nw_hid'][i])

    w3 = jnp.zeros((FUSED_H, FUSED_OUT), jnp.float32)
    w3 = w3.at[:HIDDEN, 0:1].set(params['w_out'])
    w3 = w3.at[HIDDEN:, 1:4].set(params['nw_out'])

    return (w0h.astype(jnp.bfloat16), w0p.astype(jnp.bfloat16),
            wh.astype(jnp.bfloat16), w3.astype(jnp.bfloat16))


def geometry_mlp_forward(pts, params, meta):
    """pts: (N, Rays, Samples, 3) float32.  Returns dict density/normal."""
    N, R, S, _ = pts.shape
    P = N * R * S
    # Adaptive row tile: big enough to amortize per-step grid overhead, small
    # enough that tiny inputs are not padded out to thousands of rows.
    tm = int(min(MAX_TM, -(-P // 256) * 256))
    p_pad = int(-(-P // tm) * tm)

    pts_flat = pts.reshape(P, 3).astype(jnp.float32)
    if p_pad != P:
        # Pad the points BEFORE the hash-grid encode so `h` is produced already
        # padded (no extra full-size (P,32) pad copy in HBM).
        pts_flat = jnp.pad(pts_flat, ((0, p_pad - P), (0, 0)))

    h = grid_encode(pts_flat, params['grid_table'], meta,
                    out_dtype=jnp.bfloat16)                        # (p_pad, 32)
    pts_mlp = jnp.pad(pts_flat.astype(jnp.bfloat16),
                      ((0, 0), (0, PTS_PAD - 3)))                  # (p_pad, 8)
    w0h, w0p, wh, w3 = pack_fused_weights(params)

    out = pl.pallas_call(
        geometry_kernel,
        out_shape=jax.ShapeDtypeStruct((p_pad, FUSED_OUT), jnp.float32),
        grid=(p_pad // tm,),
        in_specs=[
            pl.BlockSpec((tm, POS_FEAT), lambda i: (i, 0)),                  # h
            pl.BlockSpec((tm, PTS_PAD), lambda i: (i, 0)),                   # pts
            pl.BlockSpec((POS_FEAT, FUSED_H), lambda i: (0, 0)),             # w0h
            pl.BlockSpec((PTS_PAD, FUSED_H), lambda i: (0, 0)),              # w0p
            pl.BlockSpec((NUM_LAYERS, FUSED_H, FUSED_H),
                         lambda i: (0, 0, 0)),                               # wh
            pl.BlockSpec((FUSED_H, FUSED_OUT), lambda i: (0, 0)),            # w3
        ],
        out_specs=pl.BlockSpec((tm, FUSED_OUT), lambda i: (i, 0)),
        compiler_params=pltpu.CompilerParams(
            dimension_semantics=("parallel",)),
    )(h, pts_mlp, w0h, w0p, wh, w3)

    result = {
        'density': out[:P, 0:1].reshape(N, R, S, 1),
        'normal': out[:P, 1:4].reshape(N, R, S, 3),
    }
    # TODO(synk): require_grad=True branch ('sigma_grad' via autograd through
    # the hash grid) is not implemented; this covers require_grad=False.
    return result


# --------------------------- plain-JAX references -----------------------------
def ref_forward(pts, params, meta, use_bf16=False):
    """f32 (PyTorch-equivalent) reference; use_bf16=True mirrors the kernel's
    bf16-at-MXU casts so it can be compared tightly against the kernel."""
    N, R, S, _ = pts.shape
    flat = pts.reshape(-1, 3).astype(jnp.float32)
    h = grid_encode(flat, params['grid_table'], meta)
    cast = (lambda a: a.astype(jnp.bfloat16)) if use_bf16 else (lambda a: a)

    x = jnp.maximum(jnp.dot(cast(h), cast(params['w_in']),
                            preferred_element_type=jnp.float32), 0.0)
    for i in range(NUM_LAYERS):
        x = jnp.maximum(jnp.dot(cast(x), cast(params['w_hid'][i]),
                                preferred_element_type=jnp.float32), 0.0)
    sigma = jnp.dot(cast(x), cast(params['w_out']),
                    preferred_element_type=jnp.float32)
    density = jnp.where(sigma > 20.0, sigma,
                        jnp.log(1.0 + jnp.exp(jnp.minimum(sigma, 20.0))))

    y = jnp.maximum(jnp.dot(cast(flat), cast(params['nw_in']),
                            preferred_element_type=jnp.float32), 0.0)
    for i in range(2):
        y = jnp.maximum(jnp.dot(cast(y), cast(params['nw_hid'][i]),
                                preferred_element_type=jnp.float32), 0.0)
    n = jnp.dot(cast(y), cast(params['nw_out']),
                preferred_element_type=jnp.float32)
    if use_bf16:
        # same normalize formula as the kernel (== x / max(||x||, 1e-6))
        n = n * jax.lax.rsqrt(
            jnp.maximum(jnp.sum(n * n, axis=-1, keepdims=True), 1e-12))
    else:
        n = n / jnp.maximum(jnp.linalg.norm(n, axis=-1, keepdims=True), 1e-6)
    return density.reshape(N, R, S, 1), n.reshape(N, R, S, 3)


# ---------------------------------- main --------------------------------------
if __name__ == "__main__":
    key = jax.random.PRNGKey(0)
    k_tab, k_pts, k1, k2, k3, k4, k5, k6 = jax.random.split(key, 8)

    table, meta = make_grid_encoder(k_tab)

    def glorot(k, shape):
        fan_in, fan_out = shape[-2], shape[-1]
        lim = float(np.sqrt(6.0 / (fan_in + fan_out)))
        return jax.random.uniform(k, shape, jnp.float32, -lim, lim)

    params = {
        'grid_table': table,
        'w_in':  glorot(k1, (POS_FEAT, HIDDEN)),
        'w_hid': glorot(k2, (NUM_LAYERS, HIDDEN, HIDDEN)),
        'w_out': glorot(k3, (HIDDEN, 1)),
        'nw_in':  glorot(k4, (3, NORMAL_HIDDEN)),
        'nw_hid': glorot(k5, (2, NORMAL_HIDDEN, NORMAL_HIDDEN)),
        'nw_out': glorot(k6, (NORMAL_HIDDEN, 3)),
    }

    # pts: (N, Rays, Samples, 3), normalized positions in [0, 1)
    N, R, S = 2, 8, 8
    pts = jax.random.uniform(k_pts, (N, R, S, 3), jnp.float32)

    fwd = jax.jit(lambda p, prm: geometry_mlp_forward(p, prm, meta))
    out = fwd(pts, params)
    jax.block_until_ready(out['density'])
    jax.block_until_ready(out['normal'])

    assert out['density'].shape == (N, R, S, 1)
    assert out['normal'].shape == (N, R, S, 3)

    # Tight check: kernel vs a reference using the same bf16-at-MXU math.
    d_bf, n_bf = ref_forward(pts, params, meta, use_bf16=True)
    np.testing.assert_allclose(np.asarray(out['density']), np.asarray(d_bf),
                               rtol=1e-3, atol=1e-3)
    np.testing.assert_allclose(np.asarray(out['normal']), np.asarray(n_bf),
                               rtol=1e-3, atol=1e-3)

    # Semantic sanity check against full-f32 (PyTorch-equivalent) math; the
    # bf16 MXU operands loosen the tolerance for the normal branch.
    d_f32, n_f32 = ref_forward(pts, params, meta, use_bf16=False)
    np.testing.assert_allclose(np.asarray(out['density']), np.asarray(d_f32),
                               rtol=3e-2, atol=3e-2)
    np.testing.assert_allclose(np.asarray(out['normal']), np.asarray(n_f32),
                               rtol=3e-2, atol=3e-2)

    print("KERNEL_OK")
</pallas_src>

<mosaic_0001>
module attributes {stable_mosaic.version = 11 : i64} {
  func.func @geometry_kernel(%arg0: i32, %arg1: memref<256x32xbf16, #tpu.memory_space<vmem>>, %arg2: memref<256x8xbf16, #tpu.memory_space<vmem>>, %arg3: memref<32x96xbf16, #tpu.memory_space<vmem>>, %arg4: memref<8x96xbf16, #tpu.memory_space<vmem>>, %arg5: memref<2x96x96xbf16, #tpu.memory_space<vmem>>, %arg6: memref<96x4xbf16, #tpu.memory_space<vmem>>, %arg7: memref<256x4xf32, #tpu.memory_space<vmem>>) attributes {dimension_semantics = [#tpu.dimension_semantics<parallel>], iteration_bounds = array<i64: 1>, scalar_prefetch = 0 : i64, scratch_operands = 0 : i64, tpu.core_type = #tpu.core_type<tc>, window_params = [{transform_indices = @transform_0, window_bounds = array<i64: 256, 32>}, {transform_indices = @transform_1, window_bounds = array<i64: 256, 8>}, {pipeline_mode = #tpu.pipeline_mode<synchronous>, transform_indices = @transform_2, window_bounds = array<i64: 32, 96>}, {pipeline_mode = #tpu.pipeline_mode<synchronous>, transform_indices = @transform_3, window_bounds = array<i64: 8, 96>}, {pipeline_mode = #tpu.pipeline_mode<synchronous>, transform_indices = @transform_4, window_bounds = array<i64: 2, 96, 96>}, {pipeline_mode = #tpu.pipeline_mode<synchronous>, transform_indices = @transform_5, window_bounds = array<i64: 96, 4>}, {transform_indices = @transform_6, window_bounds = array<i64: 256, 4>}]} {
    %c0 = arith.constant 0 : index
    %c0_0 = arith.constant 0 : index
    %0 = vector.load %arg1[%c0, %c0_0] : memref<256x32xbf16, #tpu.memory_space<vmem>>, vector<256x32xbf16>
    %c0_1 = arith.constant 0 : index
    %c0_2 = arith.constant 0 : index
    %1 = vector.load %arg3[%c0_1, %c0_2] : memref<32x96xbf16, #tpu.memory_space<vmem>>, vector<32x96xbf16>
    %cst = arith.constant dense<0.000000e+00> : vector<256x96xf32>
    %2 = tpu.matmul %0, %1, %cst {dimension_numbers = #tpu.dot_dimension_numbers<[1], [0], [0], [1], [0, 0, 1, 1], [], []>} : vector<256x32xbf16>, vector<32x96xbf16>, vector<256x96xf32> -> vector<256x96xf32>
    %c0_3 = arith.constant 0 : index
    %c0_4 = arith.constant 0 : index
    %3 = vector.load %arg2[%c0_3, %c0_4] : memref<256x8xbf16, #tpu.memory_space<vmem>>, vector<256x8xbf16>
    %c0_5 = arith.constant 0 : index
    %c0_6 = arith.constant 0 : index
    %4 = vector.load %arg4[%c0_5, %c0_6] : memref<8x96xbf16, #tpu.memory_space<vmem>>, vector<8x96xbf16>
    %cst_7 = arith.constant dense<0.000000e+00> : vector<256x96xf32>
    %5 = tpu.matmul %3, %4, %cst_7 {dimension_numbers = #tpu.dot_dimension_numbers<[1], [0], [0], [1], [0, 0, 1, 1], [], []>} : vector<256x8xbf16>, vector<8x96xbf16>, vector<256x96xf32> -> vector<256x96xf32>
    %6 = arith.addf %2, %5 : vector<256x96xf32>
    %cst_8 = arith.constant 0.000000e+00 : f32
    %7 = vector.broadcast %cst_8 : f32 to vector<256x96xf32>
    %8 = arith.maximumf %6, %7 : vector<256x96xf32>
    %9 = arith.truncf %8 : vector<256x96xf32> to vector<256x96xbf16>
    %c0_9 = arith.constant 0 : index
    %c0_10 = arith.constant 0 : index
    %c0_11 = arith.constant 0 : index
    %10 = vector.load %arg5[%c0_9, %c0_10, %c0_11] : memref<2x96x96xbf16, #tpu.memory_space<vmem>>, vector<1x96x96xbf16>
    %11 = vector.shape_cast %10 : vector<1x96x96xbf16> to vector<96x96xbf16>
    %cst_12 = arith.constant dense<0.000000e+00> : vector<256x96xf32>
    %12 = tpu.matmul %9, %11, %cst_12 {dimension_numbers = #tpu.dot_dimension_numbers<[1], [0], [0], [1], [0, 0, 1, 1], [], []>} : vector<256x96xbf16>, vector<96x96xbf16>, vector<256x96xf32> -> vector<256x96xf32>
    %cst_13 = arith.constant 0.000000e+00 : f32
    %13 = vector.broadcast %cst_13 : f32 to vector<256x96xf32>
    %14 = arith.maximumf %12, %13 : vector<256x96xf32>
    %15 = arith.truncf %14 : vector<256x96xf32> to vector<256x96xbf16>
    %c1 = arith.constant 1 : index
    %c0_14 = arith.constant 0 : index
    %c0_15 = arith.constant 0 : index
    %16 = vector.load %arg5[%c1, %c0_14, %c0_15] : memref<2x96x96xbf16, #tpu.memory_space<vmem>>, vector<1x96x96xbf16>
    %17 = vector.shape_cast %16 : vector<1x96x96xbf16> to vector<96x96xbf16>
    %cst_16 = arith.constant dense<0.000000e+00> : vector<256x96xf32>
    %18 = tpu.matmul %15, %17, %cst_16 {dimension_numbers = #tpu.dot_dimension_numbers<[1], [0], [0], [1], [0, 0, 1, 1], [], []>} : vector<256x96xbf16>, vector<96x96xbf16>, vector<256x96xf32> -> vector<256x96xf32>
    %cst_17 = arith.constant 0.000000e+00 : f32
    %19 = vector.broadcast %cst_17 : f32 to vector<256x96xf32>
    %20 = arith.maximumf %18, %19 : vector<256x96xf32>
    %21 = arith.truncf %20 : vector<256x96xf32> to vector<256x96xbf16>
    %c0_18 = arith.constant 0 : index
    %c0_19 = arith.constant 0 : index
    %22 = vector.load %arg6[%c0_18, %c0_19] : memref<96x4xbf16, #tpu.memory_space<vmem>>, vector<96x4xbf16>
    %cst_20 = arith.constant dense<0.000000e+00> : vector<256x4xf32>
    %23 = tpu.matmul %21, %22, %cst_20 {dimension_numbers = #tpu.dot_dimension_numbers<[1], [0], [0], [1], [0, 0, 1, 1], [], []>} : vector<256x96xbf16>, vector<96x4xbf16>, vector<256x4xf32> -> vector<256x4xf32>
    %24 = tpu.iota {dimensions = array<i32: 1>} : vector<256x4xi32>
    %c0_i32 = arith.constant 0 : i32
    %25 = vector.broadcast %c0_i32 : i32 to vector<256x4xi32>
    %26 = arith.cmpi eq, %24, %25 : vector<256x4xi32>
    %cst_21 = arith.constant 2.000000e+01 : f32
    %27 = vector.broadcast %cst_21 : f32 to vector<256x4xf32>
    %28 = arith.cmpf ogt, %23, %27 : vector<256x4xf32>
    %cst_22 = arith.constant 2.000000e+01 : f32
    %29 = vector.broadcast %cst_22 : f32 to vector<256x4xf32>
    %30 = arith.minimumf %23, %29 : vector<256x4xf32>
    %31 = math.exp %30 : vector<256x4xf32>
    %cst_23 = arith.constant 1.000000e+00 : f32
    %32 = vector.broadcast %cst_23 : f32 to vector<256x4xf32>
    %33 = arith.addf %32, %31 : vector<256x4xf32>
    %34 = math.log %33 : vector<256x4xf32>
    %35 = arith.select %28, %23, %34 : vector<256x4xi1>, vector<256x4xf32>
    %36 = arith.mulf %23, %23 : vector<256x4xf32>
    %cst_24 = arith.constant 0.000000e+00 : f32
    %37 = vector.broadcast %cst_24 : f32 to vector<256x4xf32>
    %38 = arith.select %26, %37, %36 : vector<256x4xi1>, vector<256x4xf32>
    %cst_25 = arith.constant dense<0.000000e+00> : vector<256xf32>
    %39 = vector.multi_reduction <add>, %38, %cst_25 [1] : vector<256x4xf32> to vector<256xf32>
    %40 = vector.shape_cast %39 : vector<256xf32> to vector<256x1xf32>
    %cst_26 = arith.constant 9.99999996E-13 : f32
    %41 = vector.broadcast %cst_26 : f32 to vector<256x1xf32>
    %42 = arith.maximumf %40, %41 : vector<256x1xf32>
    %43 = math.rsqrt %42 : vector<256x1xf32>
    %44 = vector.broadcast %43 : vector<256x1xf32> to vector<256x4xf32>
    %45 = arith.mulf %23, %44 : vector<256x4xf32>
    %46 = arith.select %26, %35, %45 : vector<256x4xi1>, vector<256x4xf32>
    %c0_27 = arith.constant 0 : index
    %c0_28 = arith.constant 0 : index
    %47 = vector.load %arg7[%c0_27, %c0_28] : memref<256x4xf32, #tpu.memory_space<vmem>>, vector<256x4xf32>
    tpu.vector_store %arg7[%c0_27, %c0_28], %46 {strides = array<i32>} : memref<256x4xf32, #tpu.memory_space<vmem>>, vector<256x4xf32>,
    return
  }
  func.func @transform_0(%arg0: i32) -> (i32, i32) {
    %c0_i32 = arith.constant 0 : i32
    %c0_i32_0 = arith.constant 0 : i32
    return %arg0, %c0_i32 : i32, i32
  }
  func.func @transform_1(%arg0: i32) -> (i32, i32) {
    %c0_i32 = arith.constant 0 : i32
    %c0_i32_0 = arith.constant 0 : i32
    return %arg0, %c0_i32 : i32, i32
  }
  func.func @transform_2(%arg0: i32) -> (i32, i32) {
    %c0_i32 = arith.constant 0 : i32
    %c0_i32_0 = arith.constant 0 : i32
    %c0_i32_1 = arith.constant 0 : i32
    return %c0_i32, %c0_i32_0 : i32, i32
  }
  func.func @transform_3(%arg0: i32) -> (i32, i32) {
    %c0_i32 = arith.constant 0 : i32
    %c0_i32_0 = arith.constant 0 : i32
    %c0_i32_1 = arith.constant 0 : i32
    return %c0_i32, %c0_i32_0 : i32, i32
  }
  func.func @transform_4(%arg0: i32) -> (i32, i32, i32) {
    %c0_i32 = arith.constant 0 : i32
    %c0_i32_0 = arith.constant 0 : i32
    %c0_i32_1 = arith.constant 0 : i32
    %c0_i32_2 = arith.constant 0 : i32
    return %c0_i32, %c0_i32_0, %c0_i32_1 : i32, i32, i32
  }
  func.func @transform_5(%arg0: i32) -> (i32, i32) {
    %c0_i32 = arith.constant 0 : i32
    %c0_i32_0 = arith.constant 0 : i32
    %c0_i32_1 = arith.constant 0 : i32
    return %c0_i32, %c0_i32_0 : i32, i32
  }
  func.func @transform_6(%arg0: i32) -> (i32, i32) {
    %c0_i32 = arith.constant 0 : i32
    %c0_i32_0 = arith.constant 0 : i32
    return %arg0, %c0_i32 : i32, i32
  }
}

</mosaic_0001>

<bundles_post_ra>
// kernel: _lambda_.1
= control target key start
LH: loop header
LB: loop body
LE: loop exit
PB: predicated region body
PF: predicated region fallthrough
CT: control target
= control target key end

     0   :  { %11 = vsyncpa [#allocation3], 0  ;;  %s3675_s0 = inlined_call_operand.vmem [shape: bf16[256,32], index: 0, kind: input, shape index: {}]   ;;  %s3676_s1 = inlined_call_operand.vmem [shape: bf16[256,8], index: 1, kind: input, shape index: {}]   ;;  %s3677_s2 = inlined_call_operand.vmem [shape: bf16[32,96], index: 2, kind: input, shape index: {}]   ;;  %s3678_s3 = inlined_call_operand.hbm [shape: bf16[8,96], index: 3, kind: input, shape index: {}]   ;;  %s3679_s4 = inlined_call_operand.hbm [shape: bf16[2,96,96], index: 4, kind: input, shape index: {}]   ;;  %s3680_s5 = inlined_call_operand.hbm [shape: bf16[96,4], index: 5, kind: input, shape index: {}]   ;;  %s3681_s6 = inlined_call_operand.vmem [shape: f32[256,4], index: 6, kind: output, shape index: {}]  }
   0x1   :  { %12 = vsyncpa [#allocation5], 0  ;;  %s34_s23 = sshll.u32 %s3679_s4, 4  ;;  %s2787_s24 = smov [#allocation4]   ;;  %s35_s23 = int_to_ptr.hbm [resolvable:$true] %s34_s23 }
   0x2   :  { %s36_s25 = sshll.u32 %s2787_s24, 4  ;;  %s24_s28 = sshll.u32 %s3678_s3, 4  ;;  %s37_s25 = int_to_ptr.vmem [resolvable:$true] %s36_s25  ;;  %s25_s28 = int_to_ptr.hbm [resolvable:$true] %s24_s28 }
   0x3   :  { %s2788_s29 = smov 64   ;;  %s2789_s30 = smov 4  }
   0x4   :  { %42 = dma.hbm_to_vmem [thread:$0]  %s35_s23, 1536, %s37_s25, [#allocation5], %s2788_s29, %s2788_s29, %s2789_s30  }
   0x5   :  { %s2790_s7 = smov [#allocation2]   ;;  %s47_s11 = sshll.u32 %s3680_s5, 4  ;;  %s48_s11 = int_to_ptr.hbm [resolvable:$true] %s47_s11 }
   0x6   :  { %s26_s8 = sshll.u32 %s2790_s7, 4  ;;  %s2791_s4 = smov [#allocation6]   ;;  %s27_s8 = int_to_ptr.vmem [resolvable:$true] %s26_s8 }
   0x7   :  { %29 = dma.hbm_to_vmem [thread:$0]  %s25_s28, 64, %s27_s8, [#allocation3]  }
   0x8   :  { %s49_s12 = sshll.u32 %s2791_s4, 4  ;;  %s50_s12 = int_to_ptr.vmem [resolvable:$true] %s49_s12 }
   0x9   :  { %55 = dma.hbm_to_vmem [thread:$0]  %s48_s11, 768, %s50_s12, [#allocation5], %s2788_s29, %s2788_s29, %s2789_s30  }
   0xa   :  { %2783 = dma.done.wait [#allocation3], 64  }
   0xb   :  { %2784 = vsyncadd [#allocation3], 4294967232 }
   0xc   :  { %2785 = dma.done.wait [#allocation5], 2304  }
   0xd   :  { %2786 = vsyncadd [#allocation5], 4294964992  ;;  %vm267_vm0 = vcmask 1043456   ;;  %v137_v0 = vld [vmem:[#allocation2] sm:$0xf]  ;;  %v2470_v1 = vld [vmem:[%s3677_s2 + $0x8] sm:$0xff] }
   0xe   :  { %v269_v2 = vsel %vm267_vm0, %v137_v0, 0  ;;  %v2476_v3 = vld [vmem:[%s3676_s1 + $0x28] sm:$0xff]  ;;  %vm218_vm1 = vcmask 64512   ;;  %v2469_v4 = vld [vmem:[%s3677_s2] sm:$0xff]  ;;  %v2477_v5 = vld [vmem:[%s3676_s1 + $0x30] sm:$0xff]  ;;  %vm452_vm2 = vcmask 261120  }
   0xf   :  { %2505 = vmatpush.bf16.msra.mxu1 %v269_v2  ;;  %278 = vmatpush.bf16.msra.mxu0 %v269_v2  ;;  %v2478_v6 = vld [vmem:[%s3676_s1 + $0x38] sm:$0xff]  ;;  %v2471_v7 = vld [vmem:[%s3676_s1] sm:$0xff]  ;;  %v2472_v9 = vld [vmem:[%s3676_s1 + $0x8] sm:$0xff]  ;;  %vm686_vm3 = vcmask 785408   ;;  %vm1614_vm5 = vcmask 31744  }
  0x10   :  { %2506 = vmatpush.bf16.msra.mxu2 %v269_v2  ;;  %2507 = vmatpush.bf16.msra.mxu3 %v269_v2  ;;  %v2479_v8 = vld [vmem:[%s3676_s1 + $0x40] sm:$0xff]  ;;  %v2480_v10 = vld [vmem:[%s3676_s1 + $0x48] sm:$0xff]  ;;  %v2473_v11 = vld [vmem:[%s3676_s1 + $0x10] sm:$0xff] }
  0x11   :  { %v2453_v12 = vld [vmem:[%s3675_s0] sm:$0xff]  ;;  %v2474_v13 = vld [vmem:[%s3676_s1 + $0x18] sm:$0xff]  ;;  %v2454_v14 = vld [vmem:[%s3675_s0 + $0x8] sm:$0xff] }
  0x12   :  { %2234 = vmatmul.msk.bf16.vlgmr.msra.gmra.mxu1 %vm218_vm1, %v2476_v3  ;;  %2229 = vmatmul.msk.bf16.vlgmr.msra.gmra.mxu0 %vm218_vm1, %v2471_v7  ;;  %v2475_v15 = vld [vmem:[%s3676_s1 + $0x20] sm:$0xff]  ;;  %v2455_v16 = vld [vmem:[%s3675_s0 + $0x10] sm:$0xff]  ;;  %v2456_v17 = vld [vmem:[%s3675_s0 + $0x18] sm:$0xff] }
  0x13   :  { %507 = vmatpush.bf16.msrb.mxu1 %v2470_v1  ;;  %v2457_v20 = vld [vmem:[%s3675_s0 + $0x20] sm:$0xff]  ;;  %v2481_v22 = vld [vmem:[%s3676_s1 + $0x50] sm:$0xff]  ;;  %v2458_v25 = vld [vmem:[%s3675_s0 + $0x28] sm:$0xff] }
  0x14   :  { %2239 = vmatmul.msk.bf16.vlgmr.msra.gmra.mxu2 %vm218_vm1, %v2481_v22  ;;  %v2492_v24 = vld [vmem:[#allocation4 + $0x28] sm:$0xff]  ;;  %v2491_v27 = vld [vmem:[#allocation4 + $0x20] sm:$0xff]  ;;  %v2482_v28 = vld [vmem:[%s3676_s1 + $0x58] sm:$0xff] }
  0x15   :  { %737 = vmatpush.bf16.msrb.mxu2 %v2492_v24  ;;  %v2490_v30 = vld [vmem:[#allocation4 + $0x18] sm:$0xff]  ;;  %v2489_v31 = vld [vmem:[#allocation4 + $0x10] sm:$0xff]  ;;  %v2488_v34 = vld [vmem:[#allocation4 + $0x8] sm:$0xff] }
  0x16   :  { %v2459_v32 = vld [vmem:[%s3675_s0 + $0x30] sm:$0xff]  ;;  %v2487_v36 = vld [vmem:[#allocation4] sm:$0xff]  ;;  %v2460_v38 = vld [vmem:[%s3675_s0 + $0x38] sm:$0xff] }
  0x17   :  { %508 = vmatpush.bf16.msrb.mxu1 %v2469_v4  ;;  %v2461_v42 = vld [vmem:[%s3675_s0 + $0x40] sm:$0xff]  ;;  %v2462_v52 = vld [vmem:[%s3675_s0 + $0x48] sm:$0xff]  ;;  %v2463_v62 = vld [vmem:[%s3675_s0 + $0x50] sm:$0xff] }
  0x18   :  { %v2483_v54 = vld [vmem:[%s3676_s1 + $0x60] sm:$0xff]  ;;  %v2484_v1 = vld [vmem:[%s3676_s1 + $0x68] sm:$0xff] }
  0x19   :  { %738 = vmatpush.bf16.msrb.mxu2 %v2491_v27  ;;  %2241 = vmatmul.msk.bf16.vlgmr.msra.gmra.mxu3 %vm218_vm1, %v2483_v54  ;;  %v2465_v24 = vld [vmem:[%s3675_s0 + $0x60] sm:$0xff] }
  0x1d   :  { %739 = vmatpush.bf16.msrb.mxu2 %v2490_v30 }
  0x21   :  { %740 = vmatpush.bf16.msrb.mxu2 %v2489_v31 }
  0x22   :  { %2235 = vmatmul.msk.bf16.gmra.mxu1 %vm218_vm1, %v2477_v5  ;;  %2230 = vmatmul.msk.bf16.gmra.mxu0 %vm218_vm1, %v2472_v9  ;;  %v2464_v9 = vld [vmem:[%s3675_s0 + $0x58] sm:$0xff] }
  0x24   :  { %2240 = vmatmul.msk.bf16.gmra.mxu2 %vm218_vm1, %v2482_v28  ;;  %v2486_v28 = vld [vmem:[%s3676_s1 + $0x78] sm:$0xff] }
  0x25   :  { %741 = vmatpush.bf16.msrb.mxu2 %v2488_v34 }
  0x29   :  { %742 = vmatpush.bf16.msrb.mxu2 %v2487_v36  ;;  %2242 = vmatmul.msk.bf16.gmra.mxu3 %vm218_vm1, %v2484_v1 }
  0x32   :  { %2236 = vmatmul.msk.bf16.gmra.mxu1 %vm218_vm1, %v2478_v6  ;;  %2231 = vmatmul.msk.bf16.gmra.mxu0 %vm218_vm1, %v2473_v11  ;;  %v2485_v11 = vld [vmem:[%s3676_s1 + $0x70] sm:$0xff] }
  0x39   :  { %2243 = vmatmul.msk.bf16.gmra.mxu3 %vm218_vm1, %v2485_v11 }
  0x42   :  { %2237 = vmatmul.msk.bf16.gmra.mxu1 %vm218_vm1, %v2479_v8  ;;  %2232 = vmatmul.msk.bf16.gmra.mxu0 %vm218_vm1, %v2474_v13 }
  0x49   :  { %2244 = vmatmul.msk.bf16.gmra.mxu3 %vm218_vm1, %v2486_v28 }
  0x52   :  { %2238 = vmatmul.msk.bf16.gmra.mxu1 %vm218_vm1, %v2480_v10  ;;  %2233 = vmatmul.msk.bf16.gmra.mxu0 %vm218_vm1, %v2475_v15 }
  0x62   :  { %2317 = vmatmul.msk.bf16.vlgmr.msrb.gmra.mxu1 %vm452_vm2, %v2453_v12 }
  0x72   :  { %2318 = vmatmul.msk.bf16.gmra.mxu1 %vm452_vm2, %v2454_v14 }
  0x82   :  { %2319 = vmatmul.msk.bf16.gmra.mxu1 %vm452_vm2, %v2455_v16 }
  0x8f   :  { %v2897_v18 = vpop.f32.mrf.mxu1  ;;  %v280_v37 = vpop.f32.mrf.mxu0 }
  0x92   :  { %2320 = vmatmul.msk.bf16.gmra.mxu1 %vm452_vm2, %v2456_v17 }
  0x97   :  { %v2900_v19 = vpop.f32.mrf.mxu1  ;;  %v282_v41 = vpop.f32.mrf.mxu0 }
  0x9f   :  { %v2905_v21 = vpop.f32.mrf.mxu1  ;;  %v285_v44 = vpop.f32.mrf.mxu0 }
  0xa2   :  { %2321 = vmatmul.msk.bf16.gmra.mxu1 %vm452_vm2, %v2457_v20 }
  0xa7   :  { %v2912_v23 = vpop.f32.mrf.mxu1  ;;  %v287_v50 = vpop.f32.mrf.mxu0 }
  0xaf   :  { %v2917_v26 = vpop.f32.mrf.mxu1  ;;  %v290_v55 = vpop.f32.mrf.mxu0 }
  0xb2   :  { %2322 = vmatmul.msk.bf16.gmra.mxu1 %vm452_vm2, %v2458_v25  ;;  %v2498_v25 = vld [vmem:[#allocation4 + $0x58] sm:$0xff] }
  0xb3   :  { %971 = vmatpush.bf16.msrb.mxu3 %v2498_v25 }
  0xb7   :  { %v2924_v29 = vpop.f32.mrf.mxu1  ;;  %v292_v63 = vpop.f32.mrf.mxu0 }
  0xbf   :  { %v2929_v33 = vpop.f32.mrf.mxu1  ;;  %v295_v5 = vpop.f32.mrf.mxu0 }
  0xc2   :  { %2323 = vmatmul.msk.bf16.gmra.mxu1 %vm452_vm2, %v2459_v32 }
  0xc7   :  { %v2932_v35 = vpop.f32.mrf.mxu1  ;;  %v297_v12 = vpop.f32.mrf.mxu0 }
  0xcf   :  { %v2937_v39 = vpop.f32.mrf.mxu1  ;;  %v300_v22 = vpop.f32.mrf.mxu0 }
  0xd2   :  { %2324 = vmatmul.msk.bf16.gmra.mxu1 %vm452_vm2, %v2460_v38 }
  0xd7   :  { %v2940_v40 = vpop.f32.mrf.mxu1  ;;  %v302_v31 = vpop.f32.mrf.mxu0 }
  0xdf   :  { %v510_v43 = vpop.f32.mrf.mxu1 }
  0xe0   :  { %v511_v45 = vadd.f32 %v510_v43, %v280_v37 }
  0xe2   :  { %2325 = vmatmul.msk.bf16.gmra.mxu1 %vm452_vm2, %v2461_v42  ;;  %v590_v48 = vmax.f32 %v511_v45, 0.0  ;;  %v2466_v42 = vld [vmem:[%s3675_s0 + $0x68] sm:$0xff] }
  0xe7   :  { %v512_v46 = vpop.f32.mrf.mxu1 }
  0xe8   :  { %v513_v47 = vadd.f32 %v512_v46, %v282_v41  ;;  %v2497_v41 = vld [vmem:[#allocation4 + $0x50] sm:$0xff] }
  0xe9   :  { %972 = vmatpush.bf16.msrb.mxu3 %v2497_v41 }
  0xea   :  { %v591_v49 = vmax.f32 %v513_v47, 0.0 }
  0xec   :  { %v622_v51 = vpack.c.bf16 %v591_v49, %v590_v48 }
  0xee   :  { %2357 = vmatmul.msk.bf16.vlgmr.msrb.gmra.mxu2 %vm686_vm3, %v622_v51  ;;  %v2467_v51 = vld [vmem:[%s3675_s0 + $0x70] sm:$0xff] }
  0xef   :  { %v515_v53 = vpop.f32.mrf.mxu1 }
  0xf0   :  { %v516_v56 = vadd.f32 %v515_v53, %v285_v44  ;;  %v2496_v44 = vld [vmem:[#allocation4 + $0x48] sm:$0xff] }
  0xf1   :  { %973 = vmatpush.bf16.msrb.mxu3 %v2496_v44 }
  0xf2   :  { %2326 = vmatmul.msk.bf16.gmra.mxu1 %vm452_vm2, %v2462_v52  ;;  %v592_v59 = vmax.f32 %v516_v56, 0.0  ;;  %v2495_v52 = vld [vmem:[#allocation4 + $0x40] sm:$0xff] }
  0xf5   :  { %974 = vmatpush.bf16.msrb.mxu3 %v2495_v52 }
  0xf7   :  { %v517_v57 = vpop.f32.mrf.mxu1 }
  0xf8   :  { %v518_v58 = vadd.f32 %v517_v57, %v287_v50  ;;  %v330_v57 = vpop.f32.mrf.mxu2 }
  0xfa   :  { %v593_v60 = vmax.f32 %v518_v58, 0.0 }
  0xfc   :  { %v623_v61 = vpack.c.bf16 %v593_v60, %v592_v59  ;;  %v2494_v59 = vld [vmem:[#allocation4 + $0x38] sm:$0xff] }
  0xfd   :  { %v2468_v60 = vld [vmem:[%s3675_s0 + $0x78] sm:$0xff]  ;;  %975 = vmatpush.bf16.msrb.mxu3 %v2494_v59 }
  0xfe   :  { %2358 = vmatmul.msk.bf16.gmra.mxu2 %vm686_vm3, %v623_v61 }
  0xff   :  { %v520_v0 = vpop.f32.mrf.mxu1 }
 0x100   :  { %v521_v2 = vadd.f32 %v520_v0, %v290_v55 }
 0x102   :  { %2327 = vmatmul.msk.bf16.gmra.mxu1 %vm452_vm2, %v2463_v62  ;;  %v594_v6 = vmax.f32 %v521_v2, 0.0  ;;  %v2493_v62 = vld [vmem:[#allocation4 + $0x30] sm:$0xff] }
 0x103   :  { %976 = vmatpush.bf16.msrb.mxu3 %v2493_v62 }
 0x107   :  { %v522_v3 = vpop.f32.mrf.mxu1 }
 0x108   :  { %v523_v4 = vadd.f32 %v522_v3, %v292_v63 }
 0x10a   :  { %v595_v7 = vmax.f32 %v523_v4, 0.0 }
 0x10c   :  { %v624_v8 = vpack.c.bf16 %v595_v7, %v594_v6 }
 0x10e   :  { %2359 = vmatmul.msk.bf16.gmra.mxu2 %vm686_vm3, %v624_v8 }
 0x10f   :  { %v525_v10 = vpop.f32.mrf.mxu1 }
 0x110   :  { %v526_v13 = vadd.f32 %v525_v10, %v295_v5 }
 0x112   :  { %2328 = vmatmul.msk.bf16.gmra.mxu1 %vm452_vm2, %v2464_v9  ;;  %v596_v16 = vmax.f32 %v526_v13, 0.0 }
 0x117   :  { %v527_v14 = vpop.f32.mrf.mxu1 }
 0x118   :  { %v528_v15 = vadd.f32 %v527_v14, %v297_v12 }
 0x11a   :  { %v597_v17 = vmax.f32 %v528_v15, 0.0 }
 0x11c   :  { %v625_v20 = vpack.c.bf16 %v597_v17, %v596_v16 }
 0x11e   :  { %2360 = vmatmul.msk.bf16.gmra.mxu2 %vm686_vm3, %v625_v20 }
 0x11f   :  { %v530_v27 = vpop.f32.mrf.mxu1 }
 0x120   :  { %v531_v30 = vadd.f32 %v530_v27, %v300_v22 }
 0x122   :  { %2329 = vmatmul.msk.bf16.gmra.mxu1 %vm452_vm2, %v2465_v24  ;;  %v598_v36 = vmax.f32 %v531_v30, 0.0 }
 0x127   :  { %v532_v32 = vpop.f32.mrf.mxu1 }
 0x128   :  { %v533_v34 = vadd.f32 %v532_v32, %v302_v31 }
 0x12a   :  { %v599_v37 = vmax.f32 %v533_v34, 0.0 }
 0x12c   :  { %v626_v38 = vpack.c.bf16 %v599_v37, %v598_v36 }
 0x12e   :  { %2361 = vmatmul.msk.bf16.gmra.mxu2 %vm686_vm3, %v626_v38 }
 0x12f   :  { %v535_v43 = vpop.f32.mrf.mxu1 }
 0x130   :  { %v536_v45 = vadd.f32 %v535_v43, %v2897_v18  ;;  %v340_v43 = vpop.f32.mrf.mxu3 }
 0x132   :  { %2330 = vmatmul.msk.bf16.gmra.mxu1 %vm452_vm2, %v2466_v42  ;;  %v600_v48 = vmax.f32 %v536_v45, 0.0 }
 0x137   :  { %v537_v46 = vpop.f32.mrf.mxu1 }
 0x138   :  { %v538_v47 = vadd.f32 %v537_v46, %v2900_v19  ;;  %v342_v52 = vpop.f32.mrf.mxu3 }
 0x13a   :  { %v601_v49 = vmax.f32 %v538_v47, 0.0 }
 0x13c   :  { %v627_v50 = vpack.c.bf16 %v601_v49, %v600_v48 }
 0x13e   :  { %2362 = vmatmul.msk.bf16.gmra.mxu2 %vm686_vm3, %v627_v50 }
 0x13f   :  { %v540_v53 = vpop.f32.mrf.mxu1 }
 0x140   :  { %v541_v54 = vadd.f32 %v540_v53, %v2905_v21  ;;  %v332_v21 = vpop.f32.mrf.mxu2 }
 0x142   :  { %2331 = vmatmul.msk.bf16.gmra.mxu1 %vm452_vm2, %v2467_v51  ;;  %v602_v19 = vmax.f32 %v541_v54, 0.0 }
 0x147   :  { %v542_v18 = vpop.f32.mrf.mxu1 }
 0x148   :  { %v543_v55 = vadd.f32 %v542_v18, %v2912_v23  ;;  %v335_v4 = vpop.f32.mrf.mxu2 }
 0x14a   :  { %v603_v56 = vmax.f32 %v543_v55, 0.0 }
 0x14c   :  { %v628_v58 = vpack.c.bf16 %v603_v56, %v602_v19  ;;  %v345_v19 = vpop.f32.mrf.mxu3 }
 0x14e   :  { %2363 = vmatmul.msk.bf16.gmra.mxu2 %vm686_vm3, %v628_v58 }
 0x14f   :  { %v545_v61 = vpop.f32.mrf.mxu1 }
 0x150   :  { %v546_v23 = vadd.f32 %v545_v61, %v2917_v26  ;;  %v337_v9 = vpop.f32.mrf.mxu2 }
 0x152   :  { %2332 = vmatmul.msk.bf16.gmra.mxu1 %vm452_vm2, %v2468_v60  ;;  %v604_v1 = vmax.f32 %v546_v23, 0.0 }
 0x157   :  { %v547_v63 = vpop.f32.mrf.mxu1 }
 0x158   :  { %v548_v0 = vadd.f32 %v547_v63, %v2924_v29 }
 0x15a   :  { %v605_v2 = vmax.f32 %v548_v0, 0.0  ;;  %v347_v0 = vpop.f32.mrf.mxu3 }
 0x15c   :  { %v629_v3 = vpack.c.bf16 %v605_v2, %v604_v1 }
 0x15e   :  { %2364 = vmatmul.msk.bf16.gmra.mxu2 %vm686_vm3, %v629_v3  ;;  %v2504_v3 = vld [vmem:[#allocation6 + $0x28] sm:$0xff] }
 0x15f   :  { %v550_v5 = vpop.f32.mrf.mxu1  ;;  %1204 = vmatpush.bf16.msrb.mxu0 %v2504_v3  ;;  %2508 = vmatpush.bf16.msra.mxu2 %v2504_v3 }
 0x160   :  { %v551_v6 = vadd.f32 %v550_v5, %v2929_v33 }
 0x162   :  { %v606_v10 = vmax.f32 %v551_v6, 0.0 }
 0x167   :  { %v552_v7 = vpop.f32.mrf.mxu1 }
 0x168   :  { %v553_v8 = vadd.f32 %v552_v7, %v2932_v35  ;;  %v350_v7 = vpop.f32.mrf.mxu3 }
 0x16a   :  { %v607_v11 = vmax.f32 %v553_v8, 0.0 }
 0x16c   :  { %v630_v12 = vpack.c.bf16 %v607_v11, %v606_v10 }
 0x16e   :  { %2365 = vmatmul.msk.bf16.gmra.mxu2 %vm686_vm3, %v630_v12 }
 0x16f   :  { %v555_v26 = vpop.f32.mrf.mxu1 }
 0x170   :  { %v556_v13 = vadd.f32 %v555_v26, %v2937_v39 }
 0x171   :  { %v744_v29 = vpop.f32.mrf.mxu2 }
 0x172   :  { %v608_v17 = vmax.f32 %v556_v13, 0.0  ;;  %v824_v20 = vmax.f32 %v744_v29, 0.0 }
 0x177   :  { %v557_v14 = vpop.f32.mrf.mxu1 }
 0x178   :  { %v558_v15 = vadd.f32 %v557_v14, %v2940_v40 }
 0x179   :  { %v746_v16 = vpop.f32.mrf.mxu2 }
 0x17a   :  { %v609_v33 = vmax.f32 %v558_v15, 0.0  ;;  %v825_v22 = vmax.f32 %v746_v16, 0.0  ;;  %v2503_v15 = vld [vmem:[#allocation6 + $0x20] sm:$0xff]  ;;  %v352_v16 = vpop.f32.mrf.mxu3 }
 0x17b   :  { %1205 = vmatpush.bf16.msrb.mxu0 %v2503_v15  ;;  %2509 = vmatpush.bf16.msra.mxu2 %v2503_v15 }
 0x17c   :  { %v631_v24 = vpack.c.bf16 %v609_v33, %v608_v17  ;;  %v856_v35 = vpack.c.bf16 %v825_v22, %v824_v20 }
 0x17e   :  { %2366 = vmatmul.msk.bf16.gmra.mxu2 %vm686_vm3, %v631_v24  ;;  %2397 = vmatmul.msk.bf16.vlgmr.msrb.gmra.mxu3 %vm686_vm3, %v856_v35 }
 0x17f   :  { %v560_v25 = vpop.f32.mrf.mxu1 }
 0x180   :  { %v561_v28 = vadd.f32 %v560_v25, %v330_v57 }
 0x181   :  { %v749_v27 = vpop.f32.mrf.mxu2 }
 0x182   :  { %v610_v32 = vmax.f32 %v561_v28, 0.0  ;;  %v826_v34 = vmax.f32 %v749_v27, 0.0 }
 0x187   :  { %v562_v30 = vpop.f32.mrf.mxu1 }
 0x188   :  { %v563_v31 = vadd.f32 %v562_v30, %v332_v21 }
 0x189   :  { %v751_v39 = vpop.f32.mrf.mxu2 }
 0x18a   :  { %v611_v40 = vmax.f32 %v563_v31, 0.0  ;;  %v827_v36 = vmax.f32 %v751_v39, 0.0  ;;  %v355_v31 = vpop.f32.mrf.mxu3  ;;  %v2502_v39 = vld [vmem:[#allocation6 + $0x18] sm:$0xff] }
 0x18b   :  { %1206 = vmatpush.bf16.msrb.mxu0 %v2502_v39  ;;  %2510 = vmatpush.bf16.msra.mxu2 %v2502_v39 }
 0x18c   :  { %v632_v37 = vpack.c.bf16 %v611_v40, %v610_v32  ;;  %v857_v38 = vpack.c.bf16 %v827_v36, %v826_v34 }
 0x18e   :  { %2367 = vmatmul.msk.bf16.gmra.mxu2 %vm686_vm3, %v632_v37  ;;  %2398 = vmatmul.msk.bf16.gmra.mxu3 %vm686_vm3, %v857_v38 }
 0x18f   :  { %v565_v41 = vpop.f32.mrf.mxu1 }
 0x190   :  { %v566_v44 = vadd.f32 %v565_v41, %v335_v4 }
 0x191   :  { %v754_v42 = vpop.f32.mrf.mxu2 }
 0x192   :  { %v612_v48 = vmax.f32 %v566_v44, 0.0  ;;  %v828_v49 = vmax.f32 %v754_v42, 0.0  ;;  %v357_v36 = vpop.f32.mrf.mxu3 }
 0x197   :  { %v567_v45 = vpop.f32.mrf.mxu1 }
 0x198   :  { %v568_v46 = vadd.f32 %v567_v45, %v337_v9 }
 0x199   :  { %v756_v47 = vpop.f32.mrf.mxu2 }
 0x19a   :  { %v613_v50 = vmax.f32 %v568_v46, 0.0  ;;  %v829_v51 = vmax.f32 %v756_v47, 0.0 }
 0x19c   :  { %v633_v53 = vpack.c.bf16 %v613_v50, %v612_v48  ;;  %v858_v54 = vpack.c.bf16 %v829_v51, %v828_v49  ;;  %v2501_v48 = vld [vmem:[#allocation6 + $0x10] sm:$0xff]  ;;  %v2500_v50 = vld [vmem:[#allocation6 + $0x8] sm:$0xff] }
 0x19d   :  { %1207 = vmatpush.bf16.msrb.mxu0 %v2501_v48  ;;  %2511 = vmatpush.bf16.msra.mxu2 %v2501_v48 }
 0x19e   :  { %2368 = vmatmul.msk.bf16.gmra.mxu2 %vm686_vm3, %v633_v53  ;;  %2399 = vmatmul.msk.bf16.gmra.mxu3 %vm686_vm3, %v858_v54 }
 0x19f   :  { %v570_v18 = vpop.f32.mrf.mxu1 }
 0x1a0   :  { %v571_v56 = vadd.f32 %v570_v18, %v340_v43 }
 0x1a1   :  { %v759_v55 = vpop.f32.mrf.mxu2  ;;  %1208 = vmatpush.bf16.msrb.mxu0 %v2500_v50  ;;  %2512 = vmatpush.bf16.msra.mxu2 %v2500_v50 }
 0x1a2   :  { %v614_v60 = vmax.f32 %v571_v56, 0.0  ;;  %v830_v61 = vmax.f32 %v759_v55, 0.0 }
 0x1a7   :  { %v572_v57 = vpop.f32.mrf.mxu1 }
 0x1a8   :  { %v573_v58 = vadd.f32 %v572_v57, %v342_v52  ;;  %v2499_v52 = vld [vmem:[#allocation6] sm:$0xff] }
 0x1a9   :  { %v761_v59 = vpop.f32.mrf.mxu2  ;;  %1209 = vmatpush.bf16.msrb.mxu0 %v2499_v52  ;;  %2513 = vmatpush.bf16.msra.mxu2 %v2499_v52 }
 0x1aa   :  { %v615_v62 = vmax.f32 %v573_v58, 0.0  ;;  %v831_v21 = vmax.f32 %v761_v59, 0.0 }
 0x1ac   :  { %v634_v23 = vpack.c.bf16 %v615_v62, %v614_v60  ;;  %v859_v63 = vpack.c.bf16 %v831_v21, %v830_v61 }
 0x1ae   :  { %2369 = vmatmul.msk.bf16.gmra.mxu2 %vm686_vm3, %v634_v23  ;;  %2400 = vmatmul.msk.bf16.gmra.mxu3 %vm686_vm3, %v859_v63 }
 0x1af   :  { %v575_v1 = vpop.f32.mrf.mxu1 }
 0x1b0   :  { %v576_v4 = vadd.f32 %v575_v1, %v345_v19 }
 0x1b1   :  { %v764_v2 = vpop.f32.mrf.mxu2 }
 0x1b2   :  { %v616_v9 = vmax.f32 %v576_v4, 0.0  ;;  %v832_v10 = vmax.f32 %v764_v2, 0.0 }
 0x1b7   :  { %v577_v5 = vpop.f32.mrf.mxu1 }
 0x1b8   :  { %v578_v6 = vadd.f32 %v577_v5, %v347_v0 }
 0x1b9   :  { %v766_v8 = vpop.f32.mrf.mxu2 }
 0x1ba   :  { %v617_v11 = vmax.f32 %v578_v6, 0.0  ;;  %v833_v12 = vmax.f32 %v766_v8, 0.0 }
 0x1bc   :  { %v635_v26 = vpack.c.bf16 %v617_v11, %v616_v9  ;;  %v860_v29 = vpack.c.bf16 %v833_v12, %v832_v10 }
 0x1be   :  { %2370 = vmatmul.msk.bf16.gmra.mxu2 %vm686_vm3, %v635_v26  ;;  %2401 = vmatmul.msk.bf16.gmra.mxu3 %vm686_vm3, %v860_v29 }
 0x1bf   :  { %v580_v13 = vpop.f32.mrf.mxu1 }
 0x1c0   :  { %v581_v17 = vadd.f32 %v580_v13, %v350_v7 }
 0x1c1   :  { %v769_v14 = vpop.f32.mrf.mxu2 }
 0x1c2   :  { %v618_v24 = vmax.f32 %v581_v17, 0.0  ;;  %v834_v35 = vmax.f32 %v769_v14, 0.0 }
 0x1c7   :  { %v582_v20 = vpop.f32.mrf.mxu1 }
 0x1c8   :  { %v583_v33 = vadd.f32 %v582_v20, %v352_v16 }
 0x1c9   :  { %v771_v22 = vpop.f32.mrf.mxu2 }
 0x1ca   :  { %v619_v25 = vmax.f32 %v583_v33, 0.0  ;;  %v835_v27 = vmax.f32 %v771_v22, 0.0 }
 0x1cc   :  { %v636_v28 = vpack.c.bf16 %v619_v25, %v618_v24  ;;  %v861_v30 = vpack.c.bf16 %v835_v27, %v834_v35 }
 0x1ce   :  { %2371 = vmatmul.msk.bf16.gmra.mxu2 %vm686_vm3, %v636_v28  ;;  %2402 = vmatmul.msk.bf16.gmra.mxu3 %vm686_vm3, %v861_v30 }
 0x1cf   :  { %v585_v32 = vpop.f32.mrf.mxu1 }
 0x1d0   :  { %v586_v40 = vadd.f32 %v585_v32, %v355_v31 }
 0x1d1   :  { %v774_v34 = vpop.f32.mrf.mxu2 }
 0x1d2   :  { %v620_v42 = vmax.f32 %v586_v40, 0.0  ;;  %v836_v43 = vmax.f32 %v774_v34, 0.0 }
 0x1d7   :  { %v587_v37 = vpop.f32.mrf.mxu1 }
 0x1d8   :  { %v588_v38 = vadd.f32 %v587_v37, %v357_v36 }
 0x1d9   :  { %v776_v41 = vpop.f32.mrf.mxu2 }
 0x1da   :  { %v621_v44 = vmax.f32 %v588_v38, 0.0  ;;  %v837_v45 = vmax.f32 %v776_v41, 0.0 }
 0x1dc   :  { %v637_v46 = vpack.c.bf16 %v621_v44, %v620_v42  ;;  %v862_v47 = vpack.c.bf16 %v837_v45, %v836_v43 }
 0x1de   :  { %2372 = vmatmul.msk.bf16.gmra.mxu2 %vm686_vm3, %v637_v46  ;;  %2403 = vmatmul.msk.bf16.gmra.mxu3 %vm686_vm3, %v862_v47 }
 0x1e1   :  { %v779_v49 = vpop.f32.mrf.mxu2 }
 0x1e2   :  { %v838_v53 = vmax.f32 %v779_v49, 0.0 }
 0x1e9   :  { %v781_v51 = vpop.f32.mrf.mxu2 }
 0x1ea   :  { %v839_v54 = vmax.f32 %v781_v51, 0.0 }
 0x1ec   :  { %v863_v18 = vpack.c.bf16 %v839_v54, %v838_v53 }
 0x1ee   :  { %2404 = vmatmul.msk.bf16.gmra.mxu3 %vm686_vm3, %v863_v18 }
 0x1f1   :  { %v784_v55 = vpop.f32.mrf.mxu2 }
 0x1f2   :  { %v840_v56 = vmax.f32 %v784_v55, 0.0 }
 0x1f9   :  { %v786_v19 = vpop.f32.mrf.mxu2 }
 0x1fa   :  { %v841_v57 = vmax.f32 %v786_v19, 0.0 }
 0x1fc   :  { %v864_v58 = vpack.c.bf16 %v841_v57, %v840_v56 }
 0x1fe   :  { %2405 = vmatmul.msk.bf16.gmra.mxu3 %vm686_vm3, %v864_v58 }
 0x201   :  { %v789_v59 = vpop.f32.mrf.mxu2  ;;  %v978_v60 = vpop.f32.mrf.mxu3 }
 0x202   :  { %v842_v21 = vmax.f32 %v789_v59, 0.0  ;;  %v1058_v23 = vmax.f32 %v978_v60, 0.0 }
 0x209   :  { %v791_v61 = vpop.f32.mrf.mxu2  ;;  %v980_v62 = vpop.f32.mrf.mxu3 }
 0x20a   :  { %v843_v63 = vmax.f32 %v791_v61, 0.0  ;;  %v1059_v0 = vmax.f32 %v980_v62, 0.0 }
 0x20c   :  { %v865_v1 = vpack.c.bf16 %v843_v63, %v842_v21  ;;  %v1090_v2 = vpack.c.bf16 %v1059_v0, %v1058_v23 }
 0x20e   :  { %2406 = vmatmul.msk.bf16.gmra.mxu3 %vm686_vm3, %v865_v1  ;;  %2437 = vmatmul.msk.bf16.vlgmr.msrb.gmra.mxu0 %vm686_vm3, %v1090_v2 }
 0x211   :  { %v794_v3 = vpop.f32.mrf.mxu2  ;;  %v983_v4 = vpop.f32.mrf.mxu3 }
 0x212   :  { %v844_v7 = vmax.f32 %v794_v3, 0.0  ;;  %v1060_v8 = vmax.f32 %v983_v4, 0.0 }
 0x219   :  { %v796_v5 = vpop.f32.mrf.mxu2  ;;  %v985_v6 = vpop.f32.mrf.mxu3 }
 0x21a   :  { %v845_v9 = vmax.f32 %v796_v5, 0.0  ;;  %v1061_v10 = vmax.f32 %v985_v6, 0.0  ;;  %v1291_v5 = vlaneseq }
 0x21c   :  { %v866_v11 = vpack.c.bf16 %v845_v9, %v844_v7  ;;  %v1091_v12 = vpack.c.bf16 %v1061_v10, %v1060_v8  ;;  %v3040_v6 = vand.u32 127, %v1291_v5 }
 0x21e   :  { %2407 = vmatmul.msk.bf16.gmra.mxu3 %vm686_vm3, %v866_v11  ;;  %2438 = vmatmul.msk.bf16.gmra.mxu0 %vm686_vm3, %v1091_v12  ;;  %vm1293_vm4 = vcmp.eq.s32.totalorder %v3040_v6, 0 }
 0x221   :  { %v799_v26 = vpop.f32.mrf.mxu2  ;;  %v988_v29 = vpop.f32.mrf.mxu3 }
 0x222   :  { %v846_v15 = vmax.f32 %v799_v26, 0.0  ;;  %v1062_v16 = vmax.f32 %v988_v29, 0.0 }
 0x229   :  { %v801_v13 = vpop.f32.mrf.mxu2  ;;  %v990_v14 = vpop.f32.mrf.mxu3 }
 0x22a   :  { %v847_v17 = vmax.f32 %v801_v13, 0.0  ;;  %v1063_v20 = vmax.f32 %v990_v14, 0.0 }
 0x22c   :  { %v867_v33 = vpack.c.bf16 %v847_v17, %v846_v15  ;;  %v1092_v22 = vpack.c.bf16 %v1063_v20, %v1062_v16 }
 0x22e   :  { %2408 = vmatmul.msk.bf16.gmra.mxu3 %vm686_vm3, %v867_v33  ;;  %2439 = vmatmul.msk.bf16.gmra.mxu0 %vm686_vm3, %v1092_v22 }
 0x231   :  { %v804_v24 = vpop.f32.mrf.mxu2  ;;  %v993_v35 = vpop.f32.mrf.mxu3 }
 0x232   :  { %v848_v28 = vmax.f32 %v804_v24, 0.0  ;;  %v1064_v30 = vmax.f32 %v993_v35, 0.0 }
 0x239   :  { %v806_v25 = vpop.f32.mrf.mxu2  ;;  %v995_v27 = vpop.f32.mrf.mxu3 }
 0x23a   :  { %v849_v31 = vmax.f32 %v806_v25, 0.0  ;;  %v1065_v39 = vmax.f32 %v995_v27, 0.0 }
 0x23c   :  { %v868_v32 = vpack.c.bf16 %v849_v31, %v848_v28  ;;  %v1093_v34 = vpack.c.bf16 %v1065_v39, %v1064_v30 }
 0x23e   :  { %2409 = vmatmul.msk.bf16.gmra.mxu3 %vm686_vm3, %v868_v32  ;;  %2440 = vmatmul.msk.bf16.gmra.mxu0 %vm686_vm3, %v1093_v34 }
 0x241   :  { %v809_v40 = vpop.f32.mrf.mxu2  ;;  %v998_v36 = vpop.f32.mrf.mxu3 }
 0x242   :  { %v850_v41 = vmax.f32 %v809_v40, 0.0  ;;  %v1066_v42 = vmax.f32 %v998_v36, 0.0 }
 0x249   :  { %v811_v37 = vpop.f32.mrf.mxu2  ;;  %v1000_v38 = vpop.f32.mrf.mxu3 }
 0x24a   :  { %v851_v43 = vmax.f32 %v811_v37, 0.0  ;;  %v1067_v44 = vmax.f32 %v1000_v38, 0.0 }
 0x24c   :  { %v869_v45 = vpack.c.bf16 %v851_v43, %v850_v41  ;;  %v1094_v46 = vpack.c.bf16 %v1067_v44, %v1066_v42 }
 0x24e   :  { %2410 = vmatmul.msk.bf16.gmra.mxu3 %vm686_vm3, %v869_v45  ;;  %2441 = vmatmul.msk.bf16.gmra.mxu0 %vm686_vm3, %v1094_v46 }
 0x251   :  { %v814_v47 = vpop.f32.mrf.mxu2  ;;  %v1003_v48 = vpop.f32.mrf.mxu3 }
 0x252   :  { %v852_v51 = vmax.f32 %v814_v47, 0.0  ;;  %v1068_v52 = vmax.f32 %v1003_v48, 0.0 }
 0x259   :  { %v816_v49 = vpop.f32.mrf.mxu2  ;;  %v1005_v50 = vpop.f32.mrf.mxu3 }
 0x25a   :  { %v853_v53 = vmax.f32 %v816_v49, 0.0  ;;  %v1069_v54 = vmax.f32 %v1005_v50, 0.0 }
 0x25c   :  { %v870_v18 = vpack.c.bf16 %v853_v53, %v852_v51  ;;  %v1095_v55 = vpack.c.bf16 %v1069_v54, %v1068_v52 }
 0x25e   :  { %2411 = vmatmul.msk.bf16.gmra.mxu3 %vm686_vm3, %v870_v18  ;;  %2442 = vmatmul.msk.bf16.gmra.mxu0 %vm686_vm3, %v1095_v55 }
 0x261   :  { %v819_v19 = vpop.f32.mrf.mxu2  ;;  %v1008_v56 = vpop.f32.mrf.mxu3 }
 0x262   :  { %v854_v59 = vmax.f32 %v819_v19, 0.0  ;;  %v1070_v60 = vmax.f32 %v1008_v56, 0.0 }
 0x269   :  { %v821_v57 = vpop.f32.mrf.mxu2  ;;  %v1010_v58 = vpop.f32.mrf.mxu3 }
 0x26a   :  { %v855_v61 = vmax.f32 %v821_v57, 0.0  ;;  %v1071_v62 = vmax.f32 %v1010_v58, 0.0 }
 0x26c   :  { %v871_v21 = vpack.c.bf16 %v855_v61, %v854_v59  ;;  %v1096_v23 = vpack.c.bf16 %v1071_v62, %v1070_v60 }
 0x26e   :  { %2412 = vmatmul.msk.bf16.gmra.mxu3 %vm686_vm3, %v871_v21  ;;  %2443 = vmatmul.msk.bf16.gmra.mxu0 %vm686_vm3, %v1096_v23 }
 0x271   :  { %v1013_v63 = vpop.f32.mrf.mxu3 }
 0x272   :  { %v1072_v1 = vmax.f32 %v1013_v63, 0.0 }
 0x279   :  { %v1015_v0 = vpop.f32.mrf.mxu3 }
 0x27a   :  { %v1073_v2 = vmax.f32 %v1015_v0, 0.0 }
 0x27c   :  { %v1097_v3 = vpack.c.bf16 %v1073_v2, %v1072_v1 }
 0x27e   :  { %2444 = vmatmul.msk.bf16.gmra.mxu0 %vm686_vm3, %v1097_v3 }
 0x281   :  { %v1018_v4 = vpop.f32.mrf.mxu3 }
 0x282   :  { %v1074_v8 = vmax.f32 %v1018_v4, 0.0 }
 0x289   :  { %v1020_v7 = vpop.f32.mrf.mxu3 }
 0x28a   :  { %v1075_v9 = vmax.f32 %v1020_v7, 0.0 }
 0x28b   :  { %v3042_v10 = vpop.f32.mrf.mxu0 }
 0x28c   :  { %v1098_v11 = vpack.c.bf16 %v1075_v9, %v1074_v8  ;;  %v1550_v12 = vmul.f32 %v3042_v10, %v3042_v10  ;;  %vm1294_vm9 = vcmp.gt.f32.partialorder %v3042_v10, 20.0 }
 0x28e   :  { %2445 = vmatmul.msk.bf16.gmra.mxu0 %vm686_vm3, %v1098_v11  ;;  %v1582_v26 = vsel %vm1293_vm4, 0.0, %v1550_v12 }
 0x28f   :  { %v1615_v29 = vsel %vm1614_vm5, %v1582_v26, 0.0 }
 0x290   :  { %1616 = vadd.xlane.f32.xlu0 %v1615_v29 }
 0x291   :  { %v1023_v13 = vpop.f32.mrf.mxu3 }
 0x292   :  { %v1076_v33 = vmax.f32 %v1023_v13, 0.0 }
 0x293   :  { %v3051_v14 = vpop.f32.mrf.mxu0 }
 0x294   :  { %v1551_v15 = vmul.f32 %v3051_v14, %v3051_v14  ;;  %vm1295_vm13 = vcmp.gt.f32.partialorder %v3051_v14, 20.0 }
 0x296   :  { %v1583_v16 = vsel %vm1293_vm4, 0.0, %v1551_v15 }
 0x297   :  { %v1618_v17 = vsel %vm1614_vm5, %v1583_v16, 0.0 }
 0x298   :  { %1619 = vadd.xlane.f32.xlu0 %v1618_v17 }
 0x299   :  { %v1025_v20 = vpop.f32.mrf.mxu3 }
 0x29a   :  { %v1077_v22 = vmax.f32 %v1025_v20, 0.0 }
 0x29b   :  { %v3058_v24 = vpop.f32.mrf.mxu0 }
 0x29c   :  { %v1099_v35 = vpack.c.bf16 %v1077_v22, %v1076_v33  ;;  %v1552_v25 = vmul.f32 %v3058_v24, %v3058_v24  ;;  %vm1296_vm1 = vcmp.gt.f32.partialorder %v3058_v24, 20.0 }
 0x29e   :  { %2446 = vmatmul.msk.bf16.gmra.mxu0 %vm686_vm3, %v1099_v35  ;;  %v1584_v27 = vsel %vm1293_vm4, 0.0, %v1552_v25 }
 0x29f   :  { %v1621_v28 = vsel %vm1614_vm5, %v1584_v27, 0.0 }
 0x2a0   :  { %1622 = vadd.xlane.f32.xlu1 %v1621_v28 }
 0x2a1   :  { %v1028_v30 = vpop.f32.mrf.mxu3 }
 0x2a2   :  { %v1078_v36 = vmax.f32 %v1028_v30, 0.0 }
 0x2a3   :  { %v3066_v31 = vpop.f32.mrf.mxu0 }
 0x2a4   :  { %v1553_v39 = vmul.f32 %v3066_v31, %v3066_v31 }
 0x2a6   :  { %v1585_v32 = vsel %vm1293_vm4, 0.0, %v1553_v39 }
 0x2a7   :  { %v1624_v34 = vsel %vm1614_vm5, %v1585_v32, 0.0 }
 0x2a8   :  { %1625 = vadd.xlane.f32.xlu1 %v1624_v34 }
 0x2a9   :  { %v1030_v40 = vpop.f32.mrf.mxu3 }
 0x2aa   :  { %v1079_v37 = vmax.f32 %v1030_v40, 0.0 }
 0x2ab   :  { %v3073_v38 = vpop.f32.mrf.mxu0 }
 0x2ac   :  { %v1100_v41 = vpack.c.bf16 %v1079_v37, %v1078_v36  ;;  %v1554_v42 = vmul.f32 %v3073_v38, %v3073_v38 }
 0x2ae   :  { %2447 = vmatmul.msk.bf16.gmra.mxu0 %vm686_vm3, %v1100_v41  ;;  %v1586_v43 = vsel %vm1293_vm4, 0.0, %v1554_v42  ;;  %v1326_v42 = vmin.f32 %v3042_v10, 20.0 }
 0x2af   :  { %v1627_v44 = vsel %vm1614_vm5, %v1586_v43, 0.0 }
 0x2b0   :  { %1628 = vadd.xlane.f32.xlu2 %v1627_v44 }
 0x2b1   :  { %v1033_v45 = vpop.f32.mrf.mxu3 }
 0x2b2   :  { %v1080_v51 = vmax.f32 %v1033_v45, 0.0 }
 0x2b3   :  { %v3081_v46 = vpop.f32.mrf.mxu0 }
 0x2b4   :  { %v1555_v47 = vmul.f32 %v3081_v46, %v3081_v46 }
 0x2b6   :  { %v1587_v48 = vsel %vm1293_vm4, 0.0, %v1555_v47  ;;  %v1358_v47 = vmul.f32 1.442695, %v1326_v42 }
 0x2b7   :  { %v1630_v49 = vsel %vm1614_vm5, %v1587_v48, 0.0 }
 0x2b8   :  { %1631 = vadd.xlane.f32.xlu2 %v1630_v49  ;;  %2519 = vpow2.f32 %v1358_v47 }
 0x2b9   :  { %v1035_v50 = vpop.f32.mrf.mxu3 }
 0x2ba   :  { %v1081_v52 = vmax.f32 %v1035_v50, 0.0 }
 0x2bb   :  { %v3088_v53 = vpop.f32.mrf.mxu0 }
 0x2bc   :  { %v1101_v54 = vpack.c.bf16 %v1081_v52, %v1080_v51  ;;  %v1556_v18 = vmul.f32 %v3088_v53, %v3088_v53 }
 0x2be   :  { %2448 = vmatmul.msk.bf16.gmra.mxu0 %vm686_vm3, %v1101_v54  ;;  %v1588_v55 = vsel %vm1293_vm4, 0.0, %v1556_v18  ;;  %v1327_v18 = vmin.f32 %v3051_v14, 20.0 }
 0x2bf   :  { %v1633_v19 = vsel %vm1614_vm5, %v1588_v55, 0.0 }
 0x2c0   :  { %1634 = vadd.xlane.f32.xlu0 %v1633_v19  ;;  %v1360_v19 = vmul.f32 1.442695, %v1327_v18 }
 0x2c1   :  { %v1038_v56 = vpop.f32.mrf.mxu3 }
 0x2c2   :  { %v1082_v62 = vmax.f32 %v1038_v56, 0.0 }
 0x2c3   :  { %v3096_v57 = vpop.f32.mrf.mxu0 }
 0x2c4   :  { %v1557_v58 = vmul.f32 %v3096_v57, %v3096_v57 }
 0x2c6   :  { %v1589_v59 = vsel %vm1293_vm4, 0.0, %v1557_v58 }
 0x2c7   :  { %v1636_v60 = vsel %vm1614_vm5, %v1589_v59, 0.0  ;;  %v2520_v59 = vpop.eup %2519 }
 0x2c8   :  { %1637 = vadd.xlane.f32.xlu1 %v1636_v60 }
 0x2c9   :  { %v1040_v61 = vpop.f32.mrf.mxu3 }
 0x2ca   :  { %v1083_v21 = vmax.f32 %v1040_v61, 0.0 }
 0x2cb   :  { %v3103_v23 = vpop.f32.mrf.mxu0 }
 0x2cc   :  { %v1102_v63 = vpack.c.bf16 %v1083_v21, %v1082_v62  ;;  %v1558_v0 = vmul.f32 %v3103_v23, %v3103_v23  ;;  %v1328_v62 = vmin.f32 %v3058_v24, 20.0 }
 0x2ce   :  { %2449 = vmatmul.msk.bf16.gmra.mxu0 %vm686_vm3, %v1102_v63  ;;  %v1590_v1 = vsel %vm1293_vm4, 0.0, %v1558_v0  ;;  %v1422_v63 = vadd.f32 1.0, %v2520_v59 }
 0x2cf   :  { %v1639_v2 = vsel %vm1614_vm5, %v1590_v1, 0.0  ;;  %v1362_v1 = vmul.f32 1.442695, %v1328_v62 }
 0x2d0   :  { %1640 = vadd.xlane.f32.xlu2 %v1639_v2 }
 0x2d1   :  { %v1043_v3 = vpop.f32.mrf.mxu3 }
 0x2d2   :  { %v1084_v11 = vmax.f32 %v1043_v3, 0.0 }
 0x2d3   :  { %v3111_v4 = vpop.f32.mrf.mxu0 }
 0x2d4   :  { %v1559_v5 = vmul.f32 %v3111_v4, %v3111_v4 }
 0x2d6   :  { %v1591_v7 = vsel %vm1293_vm4, 0.0, %v1559_v5 }
 0x2d7   :  { %v1642_v8 = vsel %vm1614_vm5, %v1591_v7, 0.0 }
 0x2d8   :  { %1643 = vadd.xlane.f32.xlu0 %v1642_v8 }
 0x2d9   :  { %v1045_v9 = vpop.f32.mrf.mxu3 }
 0x2da   :  { %v1085_v12 = vmax.f32 %v1045_v9, 0.0 }
 0x2db   :  { %v3118_v26 = vpop.f32.mrf.mxu0 }
 0x2dc   :  { %v1103_v29 = vpack.c.bf16 %v1085_v12, %v1084_v11  ;;  %v1560_v13 = vmul.f32 %v3118_v26, %v3118_v26  ;;  %v1329_v11 = vmin.f32 %v3066_v31, 20.0 }
 0x2de   :  { %2450 = vmatmul.msk.bf16.gmra.mxu0 %vm686_vm3, %v1103_v29  ;;  %v1592_v15 = vsel %vm1293_vm4, 0.0, %v1560_v13 }
 0x2df   :  { %v1645_v16 = vsel %vm1614_vm5, %v1592_v15, 0.0 }
 0x2e0   :  { %1646 = vadd.xlane.f32.xlu1 %v1645_v16 }
 0x2e1   :  { %v1048_v17 = vpop.f32.mrf.mxu3 }
 0x2e2   :  { %v1086_v27 = vmax.f32 %v1048_v17, 0.0 }
 0x2e3   :  { %v3126_v20 = vpop.f32.mrf.mxu0 }
 0x2e4   :  { %v1561_v33 = vmul.f32 %v3126_v20, %v3126_v20 }
 0x2e6   :  { %v1593_v22 = vsel %vm1293_vm4, 0.0, %v1561_v33  ;;  %v1364_v33 = vmul.f32 1.442695, %v1329_v11 }
 0x2e7   :  { %v1648_v35 = vsel %vm1614_vm5, %v1593_v22, 0.0 }
 0x2e8   :  { %1649 = vadd.xlane.f32.xlu2 %v1648_v35 }
 0x2e9   :  { %v1050_v25 = vpop.f32.mrf.mxu3 }
 0x2ea   :  { %v1087_v28 = vmax.f32 %v1050_v25, 0.0 }
 0x2eb   :  { %v3133_v30 = vpop.f32.mrf.mxu0 }
 0x2ec   :  { %v1104_v39 = vpack.c.bf16 %v1087_v28, %v1086_v27  ;;  %v1562_v32 = vmul.f32 %v3133_v30, %v3133_v30 }
 0x2ee   :  { %2451 = vmatmul.msk.bf16.gmra.mxu0 %vm686_vm3, %v1104_v39  ;;  %v1594_v34 = vsel %vm1293_vm4, 0.0, %v1562_v32 }
 0x2ef   :  { %v1651_v40 = vsel %vm1614_vm5, %v1594_v34, 0.0 }
 0x2f0   :  { %1652 = vadd.xlane.f32.xlu0 %v1651_v40 }
 0x2f1   :  { %v1053_v36 = vpop.f32.mrf.mxu3 }
 0x2f2   :  { %v1088_v48 = vmax.f32 %v1053_v36, 0.0 }
 0x2f3   :  { %v3141_v37 = vpop.f32.mrf.mxu0 }
 0x2f4   :  { %v1563_v41 = vmul.f32 %v3141_v37, %v3141_v37 }
 0x2f6   :  { %v1595_v43 = vsel %vm1293_vm4, 0.0, %v1563_v41 }
 0x2f7   :  { %v1654_v44 = vsel %vm1614_vm5, %v1595_v43, 0.0 }
 0x2f8   :  { %1655 = vadd.xlane.f32.xlu1 %v1654_v44  ;;  %v1330_v44 = vmin.f32 %v3073_v38, 20.0 }
 0x2f9   :  { %v1055_v45 = vpop.f32.mrf.mxu3 }
 0x2fa   :  { %v1089_v49 = vmax.f32 %v1055_v45, 0.0 }
 0x2fb   :  { %v3149_v50 = vpop.f32.mrf.mxu0 }
 0x2fc   :  { %v1105_v51 = vpack.c.bf16 %v1089_v49, %v1088_v48  ;;  %v1564_v52 = vmul.f32 %v3149_v50, %v3149_v50 }
 0x2fe   :  { %2452 = vmatmul.msk.bf16.vlgmr.msra.gmra.mxu2 %vm686_vm3, %v1105_v51  ;;  %v1596_v54 = vsel %vm1293_vm4, 0.0, %v1564_v52 }
 0x2ff   :  { %v1657_v55 = vsel %vm1614_vm5, %v1596_v54, 0.0 }
 0x300   :  { %1658 = vadd.xlane.f32.xlu2 %v1657_v55 }
 0x303   :  { %v1617_v56 = vpop.xlane.xlu0 %1616  ;;  %v3158_v58 = vpop.f32.mrf.mxu0 }
 0x304   :  { %v1711_v60 = vmax.f32 %v1617_v56, 1e-12  ;;  %v1565_v61 = vmul.f32 %v3158_v58, %v3158_v58 }
 0x306   :  { %2521 = vrsqrt.f32 %v1711_v60  ;;  %v1597_v21 = vsel %vm1293_vm4, 0.0, %v1565_v61  ;;  %vm1749_vm7 = vweird.f32 %v1711_v60 }
 0x307   :  { %2523 = vpow2.f32 %v1360_v19  ;;  %v1660_v0 = vsel %vm1614_vm5, %v1597_v21, 0.0  ;;  %v1366_v19 = vmul.f32 1.442695, %v1330_v44 }
 0x308   :  { %1661 = vadd.xlane.f32.xlu0 %v1660_v0  ;;  %2525 = vlog2.f32 %v1422_v63 }
 0x309   :  { %2527 = vpow2.f32 %v1362_v1 }
 0x30b   :  { %v1620_v2 = vpop.xlane.xlu0 %1619  ;;  %v3166_v3 = vpop.f32.mrf.mxu0 }
 0x30c   :  { %v2522_v5 = vpop.eup %2521  ;;  %v1712_v7 = vmax.f32 %v1620_v2, 1e-12  ;;  %v1566_v8 = vmul.f32 %v3166_v3, %v3166_v3 }
 0x30d   :  { %v2524_v9 = vpop.eup %2523  ;;  %v1744_v12 = vmul.f32 %v2522_v5, %v1711_v60  ;;  %vm1750_vm6 = vweird.f32 %v2522_v5 }
 0x30e   :  { %2529 = vrsqrt.f32 %v1712_v7  ;;  %v1598_v29 = vsel %vm1293_vm4, 0.0, %v1566_v8  ;;  %v1423_v16 = vadd.f32 1.0, %v2524_v9  ;;  %v2526_v17 = vpop.eup %2525  ;;  %vm1751_vm8 = vmor %vm1749_vm7, %vm1750_vm6  ;;  %vm1759_vm11 = vweird.f32 %v1712_v7 }
 0x30f   :  { %v1745_v13 = vmul.f32 %v2522_v5, %v1744_v12  ;;  %v1663_v15 = vsel %vm1614_vm5, %v1598_v29, 0.0  ;;  %v2528_v35 = vpop.eup %2527  ;;  %v1455_v32 = vmul.f32 0.6931472, %v2526_v17  ;;  %vm1297_vm7 = vcmp.gt.f32.partialorder %v3066_v31, 20.0 }
 0x310   :  { %1664 = vadd.xlane.f32.xlu1 %v1663_v15  ;;  %2531 = vlog2.f32 %v1423_v16  ;;  %v1424_v42 = vadd.f32 1.0, %v2528_v35 }
 0x311   :  { %v1746_v22 = vmul.f32 0.5, %v1745_v13  ;;  %2533 = vpow2.f32 %v1364_v33  ;;  %v1518_v51 = vsel %vm1294_vm9, %v3042_v10, %v1455_v32  ;;  %v1332_v32 = vmin.f32 %v3088_v53, 20.0 }
 0x313   :  { %v1747_v25 = vsub.f32 1.5, %v1746_v22  ;;  %v1623_v27 = vpop.xlane.xlu1 %1622  ;;  %v3174_v28 = vpop.f32.mrf.mxu0 }
 0x314   :  { %v2530_v39 = vpop.eup %2529  ;;  %v3176_v34 = vmax.f32 %v1623_v27, 1e-12  ;;  %v1567_v40 = vmul.f32 %v3174_v28, %v3174_v28 }
 0x315   :  { %v1748_v36 = vmul.f32 %v2522_v5, %v1747_v25  ;;  %v1754_v41 = vmul.f32 %v2530_v39, %v1712_v7  ;;  %vm1760_vm10 = vweird.f32 %v2530_v39 }
 0x316   :  { %2535 = vrsqrt.f32 %v3176_v34  ;;  %v1599_v43 = vsel %vm1293_vm4, 0.0, %v1567_v40  ;;  %v2532_v54 = vpop.eup %2531  ;;  %vm1761_vm12 = vmor %vm1759_vm11, %vm1760_vm10  ;;  %vm1769_vm15 = vweird.f32 %v3176_v34  ;;  %vm1298_vm11 = vcmp.gt.f32.partialorder %v3073_v38, 20.0 }
 0x317   :  { %v1752_v45 = vsel %vm1751_vm8, %v2522_v5, %v1748_v36  ;;  %v1755_v47 = vmul.f32 %v2530_v39, %v1754_v41  ;;  %v1666_v48 = vsel %vm1614_vm5, %v1599_v43, 0.0  ;;  %v2534_v55 = vpop.eup %2533  ;;  %2537 = vlog2.f32 %v1424_v42 }
 0x318   :  { %v2063_v49 = vmul.f32 %v1752_v45, %v3042_v10  ;;  %1667 = vadd.xlane.f32.xlu2 %v1666_v48  ;;  %v1331_v10 = vmin.f32 %v3081_v46, 20.0  ;;  %v1457_v63 = vmul.f32 0.6931472, %v2532_v54  ;;  %v1425_v2 = vadd.f32 1.0, %v2534_v55 }
 0x319   :  { %v1756_v52 = vmul.f32 0.5, %v1755_v47 }
 0x31a   :  { %v2095_v18 = vsel %vm1293_vm4, %v1518_v51, %v2063_v49  ;;  %v1368_v12 = vmul.f32 1.442695, %v1331_v10  ;;  %v1519_v13 = vsel %vm1295_vm13, %v3051_v14, %v1457_v63  ;;  %v1370_v49 = vmul.f32 1.442695, %v1332_v32 }
 0x31b   :  { %2127 = vst.msk [vmem:[%s3681_s6] sm:$0xff] %vm1614_vm5, %v2095_v18  ;;  %v1757_v56 = vsub.f32 1.5, %v1756_v52  ;;  %v1626_v59 = vpop.xlane.xlu1 %1625  ;;  %v3194_v60 = vpop.f32.mrf.mxu0 }
 0x31c   :  { %v2536_v61 = vpop.eup %2535  ;;  %v3197_v62 = vmax.f32 %v1626_v59, 1e-12  ;;  %v1568_v21 = vmul.f32 %v3194_v60, %v3194_v60 }
 0x31d   :  { %v1758_v0 = vmul.f32 %v2530_v39, %v1757_v56  ;;  %v1764_v1 = vmul.f32 %v2536_v61, %v3176_v34  ;;  %v2538_v7 = vpop.eup %2537  ;;  %vm1770_vm14 = vweird.f32 %v2536_v61 }
 0x31e   :  { %2539 = vrsqrt.f32 %v3197_v62  ;;  %v1600_v5 = vsel %vm1293_vm4, 0.0, %v1568_v21  ;;  %v1459_v25 = vmul.f32 0.6931472, %v2538_v7  ;;  %vm1771_vm0 = vmor %vm1769_vm15, %vm1770_vm14  ;;  %vm1779_vm3 = vweird.f32 %v3197_v62 }
 0x31f   :  { %2541 = vpow2.f32 %v1366_v19  ;;  %v1762_v8 = vsel %vm1761_vm12, %v2530_v39, %v1758_v0  ;;  %v1765_v9 = vmul.f32 %v2536_v61, %v1764_v1  ;;  %v1669_v11 = vsel %vm1614_vm5, %v1600_v5, 0.0 }
 0x320   :  { %v2064_v29 = vmul.f32 %v1762_v8, %v3051_v14  ;;  %1670 = vadd.xlane.f32.xlu0 %v1669_v11  ;;  %2543 = vlog2.f32 %v1425_v2  ;;  %v1520_v34 = vsel %vm1296_vm1, %v3058_v24, %v1459_v25  ;;  %v1333_v1 = vmin.f32 %v3096_v57, 20.0 }
 0x321   :  { %v1766_v15 = vmul.f32 0.5, %v1765_v9  ;;  %2545 = vpow2.f32 %v1368_v12  ;;  %vm1299_vm15 = vcmp.gt.f32.partialorder %v3081_v46, 20.0 }
 0x322   :  { %v2096_v16 = vsel %vm1293_vm4, %v1519_v13, %v2064_v29  ;;  %v1372_v13 = vmul.f32 1.442695, %v1333_v1 }
 0x323   :  { %2128 = vst.msk [vmem:[%s3681_s6 + $0x8] sm:$0xff] %vm1614_vm5, %v2096_v16  ;;  %v1767_v17 = vsub.f32 1.5, %v1766_v15  ;;  %v1629_v33 = vpop.xlane.xlu2 %1628  ;;  %v3215_v22 = vpop.f32.mrf.mxu0 }
 0x324   :  { %v2540_v35 = vpop.eup %2539  ;;  %v3217_v27 = vmax.f32 %v1629_v33, 1e-12  ;;  %v1569_v14 = vmul.f32 %v3215_v22, %v3215_v22 }
 0x325   :  { %v2542_v39 = vpop.eup %2541  ;;  %v1768_v40 = vmul.f32 %v2536_v61, %v1767_v17  ;;  %v1774_v36 = vmul.f32 %v2540_v35, %v3197_v62  ;;  %vm1780_vm2 = vweird.f32 %v2540_v35 }
 0x326   :  { %2547 = vrsqrt.f32 %v3217_v27  ;;  %v1601_v41 = vsel %vm1293_vm4, 0.0, %v1569_v14  ;;  %v1426_v45 = vadd.f32 1.0, %v2542_v39  ;;  %v2544_v48 = vpop.eup %2543  ;;  %vm1781_vm6 = vmor %vm1779_vm3, %vm1780_vm2  ;;  %vm1789_vm9 = vweird.f32 %v3217_v27 }
 0x327   :  { %v1772_v42 = vsel %vm1771_vm0, %v2536_v61, %v1768_v40  ;;  %v1775_v43 = vmul.f32 %v2540_v35, %v1774_v36  ;;  %v1672_v44 = vsel %vm1614_vm5, %v1601_v41, 0.0  ;;  %v2546_v52 = vpop.eup %2545  ;;  %v1461_v59 = vmul.f32 0.6931472, %v2544_v48 }
 0x328   :  { %v2065_v47 = vmul.f32 %v1772_v42, %v3058_v24  ;;  %1673 = vadd.xlane.f32.xlu1 %v1672_v44  ;;  %2549 = vlog2.f32 %v1426_v45  ;;  %v1427_v63 = vadd.f32 1.0, %v2546_v52  ;;  %vm1300_vm3 = vcmp.gt.f32.partialorder %v3088_v53, 20.0 }
 0x329   :  { %v1776_v51 = vmul.f32 0.5, %v1775_v43  ;;  %2551 = vpow2.f32 %v1370_v49  ;;  %v1521_v62 = vsel %vm1297_vm7, %v3066_v31, %v1461_v59  ;;  %v1335_v59 = vmin.f32 %v3111_v4, 20.0 }
 0x32a   :  { %v2097_v54 = vsel %vm1293_vm4, %v1520_v34, %v2065_v47 }
 0x32b   :  { %2129 = vst.msk [vmem:[%s3681_s6 + $0x10] sm:$0xff] %vm1614_vm5, %v2097_v54  ;;  %v1777_v18 = vsub.f32 1.5, %v1776_v51  ;;  %v1632_v55 = vpop.xlane.xlu2 %1631  ;;  %v3237_v19 = vpop.f32.mrf.mxu0 }
 0x32c   :  { %v2548_v56 = vpop.eup %2547  ;;  %v3239_v24 = vmax.f32 %v1632_v55, 1e-12  ;;  %v1570_v61 = vmul.f32 %v3237_v19, %v3237_v19 }
 0x32d   :  { %v1778_v10 = vmul.f32 %v2540_v35, %v1777_v18  ;;  %v1784_v21 = vmul.f32 %v2548_v56, %v3217_v27  ;;  %vm1790_vm8 = vweird.f32 %v2548_v56 }
 0x32e   :  { %2553 = vrsqrt.f32 %v3239_v24  ;;  %v1602_v0 = vsel %vm1293_vm4, 0.0, %v1570_v61  ;;  %v2550_v12 = vpop.eup %2549  ;;  %vm1791_vm10 = vmor %vm1789_vm9, %vm1790_vm8  ;;  %vm1799_vm13 = vweird.f32 %v3239_v24  ;;  %vm1301_vm9 = vcmp.gt.f32.partialorder %v3096_v57, 20.0 }
 0x32f   :  { %v1782_v2 = vsel %vm1781_vm6, %v2540_v35, %v1778_v10  ;;  %v1785_v5 = vmul.f32 %v2548_v56, %v1784_v21  ;;  %v1675_v8 = vsel %vm1614_vm5, %v1602_v0, 0.0  ;;  %v2552_v7 = vpop.eup %2551  ;;  %2555 = vlog2.f32 %v1427_v63 }
 0x330   :  { %v2066_v9 = vmul.f32 %v1782_v2, %v3066_v31  ;;  %1676 = vadd.xlane.f32.xlu2 %v1675_v8  ;;  %v1334_v31 = vmin.f32 %v3103_v23, 20.0  ;;  %v1463_v14 = vmul.f32 0.6931472, %v2550_v12  ;;  %v1428_v40 = vadd.f32 1.0, %v2552_v7 }
 0x331   :  { %v1786_v11 = vmul.f32 0.5, %v1785_v5 }
 0x332   :  { %v2098_v29 = vsel %vm1293_vm4, %v1521_v62, %v2066_v9  ;;  %v1374_v44 = vmul.f32 1.442695, %v1334_v31  ;;  %v1522_v47 = vsel %vm1298_vm11, %v3073_v38, %v1463_v14  ;;  %v1376_v9 = vmul.f32 1.442695, %v1335_v59 }
 0x333   :  { %2130 = vst.msk [vmem:[%s3681_s6 + $0x18] sm:$0xff] %vm1614_vm5, %v2098_v29  ;;  %v1787_v15 = vsub.f32 1.5, %v1786_v11  ;;  %v1635_v16 = vpop.xlane.xlu0 %1634  ;;  %v3259_v17 = vpop.f32.mrf.mxu0 }
 0x334   :  { %v2554_v33 = vpop.eup %2553  ;;  %v3262_v35 = vmax.f32 %v1635_v16, 1e-12  ;;  %v1571_v25 = vmul.f32 %v3259_v17, %v3259_v17 }
 0x335   :  { %v1788_v39 = vmul.f32 %v2548_v56, %v1787_v15  ;;  %v1794_v32 = vmul.f32 %v2554_v33, %v3239_v24  ;;  %v2556_v27 = vpop.eup %2555  ;;  %vm1800_vm12 = vweird.f32 %v2554_v33 }
 0x336   :  { %2557 = vrsqrt.f32 %v3262_v35  ;;  %v1603_v36 = vsel %vm1293_vm4, 0.0, %v1571_v25  ;;  %v1465_v18 = vmul.f32 0.6931472, %v2556_v27  ;;  %vm1801_vm14 = vmor %vm1799_vm13, %vm1800_vm12  ;;  %vm1809_vm1 = vweird.f32 %v3262_v35 }
 0x337   :  { %2559 = vpow2.f32 %v1372_v13  ;;  %v1792_v41 = vsel %vm1791_vm10, %v2548_v56, %v1788_v39  ;;  %v1795_v42 = vmul.f32 %v2554_v33, %v1794_v32  ;;  %v1678_v43 = vsel %vm1614_vm5, %v1603_v36, 0.0 }
 0x338   :  { %v2067_v45 = vmul.f32 %v1792_v41, %v3073_v38  ;;  %1679 = vadd.xlane.f32.xlu0 %v1678_v43  ;;  %2561 = vlog2.f32 %v1428_v40  ;;  %v1523_v24 = vsel %vm1299_vm15, %v3081_v46, %v1465_v18  ;;  %v1336_v32 = vmin.f32 %v3118_v26, 20.0 }
 0x339   :  { %v1796_v48 = vmul.f32 0.5, %v1795_v42  ;;  %2563 = vpow2.f32 %v1374_v44  ;;  %vm1302_vm13 = vcmp.gt.f32.partialorder %v3103_v23, 20.0 }
 0x33a   :  { %v2099_v34 = vsel %vm1293_vm4, %v1522_v47, %v2067_v45  ;;  %v1378_v47 = vmul.f32 1.442695, %v1336_v32 }
 0x33b   :  { %2131 = vst.msk [vmem:[%s3681_s6 + $0x20] sm:$0xff] %vm1614_vm5, %v2099_v34  ;;  %v1797_v49 = vsub.f32 1.5, %v1796_v48  ;;  %v1638_v51 = vpop.xlane.xlu1 %1637  ;;  %v3281_v52 = vpop.f32.mrf.mxu0 }
 0x33c   :  { %v2558_v54 = vpop.eup %2557  ;;  %v3283_v55 = vmax.f32 %v1638_v51, 1e-12  ;;  %v1572_v38 = vmul.f32 %v3281_v52, %v3281_v52 }
 0x33d   :  { %v2560_v56 = vpop.eup %2559  ;;  %v1798_v61 = vmul.f32 %v2554_v33, %v1797_v49  ;;  %v1804_v10 = vmul.f32 %v2558_v54, %v3262_v35  ;;  %vm1810_vm0 = vweird.f32 %v2558_v54 }
 0x33e   :  { %2565 = vrsqrt.f32 %v3283_v55  ;;  %v1604_v21 = vsel %vm1293_vm4, 0.0, %v1572_v38  ;;  %v1429_v2 = vadd.f32 1.0, %v2560_v56  ;;  %v2562_v8 = vpop.eup %2561  ;;  %vm1811_vm2 = vmor %vm1809_vm1, %vm1810_vm0  ;;  %vm1819_vm7 = vweird.f32 %v3283_v55 }
 0x33f   :  { %v1802_v63 = vsel %vm1801_vm14, %v2554_v33, %v1798_v61  ;;  %v1805_v0 = vmul.f32 %v2558_v54, %v1804_v10  ;;  %v1681_v1 = vsel %vm1614_vm5, %v1604_v21, 0.0  ;;  %v2564_v11 = vpop.eup %2563  ;;  %v1467_v16 = vmul.f32 0.6931472, %v2562_v8 }
 0x340   :  { %v2068_v5 = vmul.f32 %v1802_v63, %v3081_v46  ;;  %1682 = vadd.xlane.f32.xlu1 %v1681_v1  ;;  %2567 = vlog2.f32 %v1429_v2  ;;  %v1430_v14 = vadd.f32 1.0, %v2564_v11  ;;  %vm1303_vm1 = vcmp.gt.f32.partialorder %v3111_v4, 20.0 }
 0x341   :  { %v1806_v62 = vmul.f32 0.5, %v1805_v0  ;;  %2569 = vpow2.f32 %v1376_v9  ;;  %v1524_v35 = vsel %vm1300_vm3, %v3088_v53, %v1467_v16  ;;  %v1338_v16 = vmin.f32 %v3133_v30, 20.0 }
 0x342   :  { %v2100_v12 = vsel %vm1293_vm4, %v1523_v24, %v2068_v5 }
 0x343   :  { %2132 = vst.msk [vmem:[%s3681_s6 + $0x28] sm:$0xff] %vm1614_vm5, %v2100_v12  ;;  %v1807_v29 = vsub.f32 1.5, %v1806_v62  ;;  %v1641_v7 = vpop.xlane.xlu2 %1640  ;;  %v3303_v13 = vpop.f32.mrf.mxu0 }
 0x344   :  { %v2566_v15 = vpop.eup %2565  ;;  %v3305_v46 = vmax.f32 %v1641_v7, 1e-12  ;;  %v1573_v33 = vmul.f32 %v3303_v13, %v3303_v13 }
 0x345   :  { %v1808_v31 = vmul.f32 %v2558_v54, %v1807_v29  ;;  %v1814_v25 = vmul.f32 %v2566_v15, %v3283_v55  ;;  %vm1820_vm6 = vweird.f32 %v2566_v15 }
 0x346   :  { %2571 = vrsqrt.f32 %v3305_v46  ;;  %v1605_v39 = vsel %vm1293_vm4, 0.0, %v1573_v33  ;;  %v2568_v44 = vpop.eup %2567  ;;  %vm1821_vm8 = vmor %vm1819_vm7, %vm1820_vm6  ;;  %vm1829_vm11 = vweird.f32 %v3305_v46  ;;  %vm1304_vm7 = vcmp.gt.f32.partialorder %v3118_v26, 20.0 }
 0x347   :  { %v1812_v40 = vsel %vm1811_vm2, %v2558_v54, %v1808_v31  ;;  %v1815_v36 = vmul.f32 %v2566_v15, %v1814_v25  ;;  %v1684_v41 = vsel %vm1614_vm5, %v1605_v39, 0.0  ;;  %v2570_v27 = vpop.eup %2569  ;;  %2573 = vlog2.f32 %v1430_v14 }
 0x348   :  { %v2069_v42 = vmul.f32 %v1812_v40, %v3088_v53  ;;  %1685 = vadd.xlane.f32.xlu2 %v1684_v41  ;;  %v1337_v53 = vmin.f32 %v3126_v20, 20.0  ;;  %v1469_v38 = vmul.f32 0.6931472, %v2568_v44  ;;  %v1431_v61 = vadd.f32 1.0, %v2570_v27 }
 0x349   :  { %v1816_v43 = vmul.f32 0.5, %v1815_v36 }
 0x34a   :  { %v2101_v45 = vsel %vm1293_vm4, %v1524_v35, %v2069_v42  ;;  %v1380_v1 = vmul.f32 1.442695, %v1337_v53  ;;  %v1525_v5 = vsel %vm1301_vm9, %v3096_v57, %v1469_v38  ;;  %v1382_v42 = vmul.f32 1.442695, %v1338_v16 }
 0x34b   :  { %2133 = vst.msk [vmem:[%s3681_s6 + $0x30] sm:$0xff] %vm1614_vm5, %v2101_v45  ;;  %v1817_v48 = vsub.f32 1.5, %v1816_v43  ;;  %v1644_v34 = vpop.xlane.xlu0 %1643  ;;  %v3325_v49 = vpop.f32.mrf.mxu0 }
 0x34c   :  { %v2572_v51 = vpop.eup %2571  ;;  %v3328_v54 = vmax.f32 %v1644_v34, 1e-12  ;;  %v1574_v18 = vmul.f32 %v3325_v49, %v3325_v49 }
 0x34d   :  { %v1818_v56 = vmul.f32 %v2566_v15, %v1817_v48  ;;  %v1824_v59 = vmul.f32 %v2572_v51, %v3305_v46  ;;  %v2574_v55 = vpop.eup %2573  ;;  %vm1830_vm10 = vweird.f32 %v2572_v51 }
 0x34e   :  { %2575 = vrsqrt.f32 %v3328_v54  ;;  %v1606_v10 = vsel %vm1293_vm4, 0.0, %v1574_v18  ;;  %v1471_v29 = vmul.f32 0.6931472, %v2574_v55  ;;  %vm1831_vm12 = vmor %vm1829_vm11, %vm1830_vm10  ;;  %vm1839_vm15 = vweird.f32 %v3328_v54 }
 0x34f   :  { %2577 = vpow2.f32 %v1378_v47  ;;  %v1822_v21 = vsel %vm1821_vm8, %v2566_v15, %v1818_v56  ;;  %v1825_v63 = vmul.f32 %v2572_v51, %v1824_v59  ;;  %v1687_v0 = vsel %vm1614_vm5, %v1606_v10, 0.0 }
 0x350   :  { %v2070_v2 = vmul.f32 %v1822_v21, %v3096_v57  ;;  %1688 = vadd.xlane.f32.xlu0 %v1687_v0  ;;  %2579 = vlog2.f32 %v1431_v61  ;;  %v1526_v46 = vsel %vm1302_vm13, %v3103_v23, %v1471_v29  ;;  %v1339_v59 = vmin.f32 %v3141_v37, 20.0 }
 0x351   :  { %v1826_v8 = vmul.f32 0.5, %v1825_v63  ;;  %2581 = vpow2.f32 %v1380_v1  ;;  %vm1305_vm11 = vcmp.gt.f32.partialorder %v3126_v20, 20.0 }
 0x352   :  { %v2102_v24 = vsel %vm1293_vm4, %v1525_v5, %v2070_v2  ;;  %v1384_v5 = vmul.f32 1.442695, %v1339_v59 }
 0x353   :  { %2134 = vst.msk [vmem:[%s3681_s6 + $0x38] sm:$0xff] %vm1614_vm5, %v2102_v24  ;;  %v1827_v9 = vsub.f32 1.5, %v1826_v8  ;;  %v1647_v62 = vpop.xlane.xlu1 %1646  ;;  %v3347_v11 = vpop.f32.mrf.mxu0 }
 0x354   :  { %v2576_v12 = vpop.eup %2575  ;;  %v3349_v7 = vmax.f32 %v1647_v62, 1e-12  ;;  %v1575_v57 = vmul.f32 %v3347_v11, %v3347_v11 }
 0x355   :  { %v2578_v15 = vpop.eup %2577  ;;  %v1828_v33 = vmul.f32 %v2572_v51, %v1827_v9  ;;  %v1834_v31 = vmul.f32 %v2576_v12, %v3328_v54  ;;  %vm1840_vm14 = vweird.f32 %v2576_v12 }
 0x356   :  { %2583 = vrsqrt.f32 %v3349_v7  ;;  %v1607_v25 = vsel %vm1293_vm4, 0.0, %v1575_v57  ;;  %v1432_v40 = vadd.f32 1.0, %v2578_v15  ;;  %v2580_v41 = vpop.eup %2579  ;;  %vm1841_vm0 = vmor %vm1839_vm15, %vm1840_vm14  ;;  %vm1849_vm3 = vweird.f32 %v3349_v7 }
 0x357   :  { %v1832_v14 = vsel %vm1831_vm12, %v2572_v51, %v1828_v33  ;;  %v1835_v39 = vmul.f32 %v2576_v12, %v1834_v31  ;;  %v1690_v32 = vsel %vm1614_vm5, %v1607_v25, 0.0  ;;  %v2582_v43 = vpop.eup %2581  ;;  %v1473_v34 = vmul.f32 0.6931472, %v2580_v41 }
 0x358   :  { %v2071_v36 = vmul.f32 %v1832_v14, %v3103_v23  ;;  %1691 = vadd.xlane.f32.xlu1 %v1690_v32  ;;  %2585 = vlog2.f32 %v1432_v40  ;;  %v1433_v38 = vadd.f32 1.0, %v2582_v43  ;;  %vm1306_vm15 = vcmp.gt.f32.partialorder %v3133_v30, 20.0 }
 0x359   :  { %v1836_v35 = vmul.f32 0.5, %v1835_v39  ;;  %2587 = vpow2.f32 %v1382_v42  ;;  %v1527_v54 = vsel %vm1303_vm1, %v3111_v4, %v1473_v34  ;;  %v1341_v34 = vmin.f32 %v3158_v58, 20.0 }
 0x35a   :  { %v2103_v44 = vsel %vm1293_vm4, %v1526_v46, %v2071_v36 }
 0x35b   :  { %2135 = vst.msk [vmem:[%s3681_s6 + $0x40] sm:$0xff] %vm1614_vm5, %v2103_v44  ;;  %v1837_v45 = vsub.f32 1.5, %v1836_v35  ;;  %v1650_v27 = vpop.xlane.xlu2 %1649  ;;  %v3369_v47 = vpop.f32.mrf.mxu0 }
 0x35c   :  { %v2584_v48 = vpop.eup %2583  ;;  %v3371_v23 = vmax.f32 %v1650_v27, 1e-12  ;;  %v1576_v51 = vmul.f32 %v3369_v47, %v3369_v47 }
 0x35d   :  { %v1838_v53 = vmul.f32 %v2576_v12, %v1837_v45  ;;  %v1844_v18 = vmul.f32 %v2584_v48, %v3349_v7  ;;  %vm1850_vm2 = vweird.f32 %v2584_v48 }
 0x35e   :  { %2589 = vrsqrt.f32 %v3371_v23  ;;  %v1608_v56 = vsel %vm1293_vm4, 0.0, %v1576_v51  ;;  %v2586_v1 = vpop.eup %2585  ;;  %vm1851_vm6 = vmor %vm1849_vm3, %vm1850_vm2  ;;  %vm1859_vm9 = vweird.f32 %v3371_v23  ;;  %vm1307_vm3 = vcmp.gt.f32.partialorder %v3141_v37, 20.0 }
 0x35f   :  { %v1842_v61 = vsel %vm1841_vm0, %v2576_v12, %v1838_v53  ;;  %v1845_v10 = vmul.f32 %v2584_v48, %v1844_v18  ;;  %v1693_v21 = vsel %vm1614_vm5, %v1608_v56, 0.0  ;;  %v2588_v55 = vpop.eup %2587  ;;  %2591 = vlog2.f32 %v1433_v38 }
 0x360   :  { %v2072_v63 = vmul.f32 %v1842_v61, %v3111_v4  ;;  %1694 = vadd.xlane.f32.xlu2 %v1693_v21  ;;  %v1340_v4 = vmin.f32 %v3149_v50, 20.0  ;;  %v1475_v57 = vmul.f32 0.6931472, %v2586_v1  ;;  %v1434_v33 = vadd.f32 1.0, %v2588_v55 }
 0x361   :  { %v1846_v0 = vmul.f32 0.5, %v1845_v10 }
 0x362   :  { %v2104_v2 = vsel %vm1293_vm4, %v1527_v54, %v2072_v63  ;;  %v1386_v32 = vmul.f32 1.442695, %v1340_v4  ;;  %v1528_v36 = vsel %vm1304_vm7, %v3118_v26, %v1475_v57  ;;  %v1388_v63 = vmul.f32 1.442695, %v1341_v34 }
 0x363   :  { %2136 = vst.msk [vmem:[%s3681_s6 + $0x48] sm:$0xff] %vm1614_vm5, %v2104_v2  ;;  %v1847_v8 = vsub.f32 1.5, %v1846_v0  ;;  %v1653_v24 = vpop.xlane.xlu0 %1652  ;;  %v3391_v9 = vpop.f32.mrf.mxu0 }
 0x364   :  { %v2590_v62 = vpop.eup %2589  ;;  %v3394_v12 = vmax.f32 %v1653_v24, 1e-12  ;;  %v1577_v29 = vmul.f32 %v3391_v9, %v3391_v9 }
 0x365   :  { %v1848_v15 = vmul.f32 %v2584_v48, %v1847_v8  ;;  %v1854_v16 = vmul.f32 %v2590_v62, %v3371_v23  ;;  %v2592_v7 = vpop.eup %2591  ;;  %vm1860_vm8 = vweird.f32 %v2590_v62 }
 0x366   :  { %2593 = vrsqrt.f32 %v3394_v12  ;;  %v1609_v31 = vsel %vm1293_vm4, 0.0, %v1577_v29  ;;  %v1477_v45 = vmul.f32 0.6931472, %v2592_v7  ;;  %vm1861_vm10 = vmor %vm1859_vm9, %vm1860_vm8  ;;  %vm1869_vm13 = vweird.f32 %v3394_v12 }
 0x367   :  { %2595 = vpow2.f32 %v1384_v5  ;;  %v1852_v25 = vsel %vm1851_vm6, %v2584_v48, %v1848_v15  ;;  %v1855_v14 = vmul.f32 %v2590_v62, %v1854_v16  ;;  %v1696_v39 = vsel %vm1614_vm5, %v1609_v31, 0.0 }
 0x368   :  { %v2073_v40 = vmul.f32 %v1852_v25, %v3118_v26  ;;  %1697 = vadd.xlane.f32.xlu0 %v1696_v39  ;;  %2597 = vlog2.f32 %v1434_v33  ;;  %v1529_v23 = vsel %vm1305_vm11, %v3126_v20, %v1477_v45  ;;  %v1342_v25 = vmin.f32 %v3166_v3, 20.0 }
 0x369   :  { %v1856_v41 = vmul.f32 0.5, %v1855_v14  ;;  %2599 = vpow2.f32 %v1386_v32  ;;  %vm1308_vm9 = vcmp.gt.f32.partialorder %v3149_v50, 20.0 }
 0x36a   :  { %v2105_v46 = vsel %vm1293_vm4, %v1528_v36, %v2073_v40 }
 0x36b   :  { %2137 = vst.msk [vmem:[%s3681_s6 + $0x50] sm:$0xff] %vm1614_vm5, %v2105_v46  ;;  %v1857_v42 = vsub.f32 1.5, %v1856_v41  ;;  %v1656_v35 = vpop.xlane.xlu1 %1655  ;;  %v3413_v43 = vpop.f32.mrf.mxu0 }
 0x36c   :  { %v2594_v44 = vpop.eup %2593  ;;  %v3415_v27 = vmax.f32 %v1656_v35, 1e-12  ;;  %v1578_v26 = vmul.f32 %v3413_v43, %v3413_v43 }
 0x36d   :  { %v2596_v48 = vpop.eup %2595  ;;  %v1858_v51 = vmul.f32 %v2590_v62, %v1857_v42  ;;  %v1864_v53 = vmul.f32 %v2594_v44, %v3394_v12  ;;  %vm1870_vm12 = vweird.f32 %v2594_v44  ;;  %v1390_v42 = vmul.f32 1.442695, %v1342_v25 }
 0x36e   :  { %2601 = vrsqrt.f32 %v3415_v27  ;;  %v1610_v18 = vsel %vm1293_vm4, 0.0, %v1578_v26  ;;  %v1435_v61 = vadd.f32 1.0, %v2596_v48  ;;  %v2598_v21 = vpop.eup %2597  ;;  %vm1871_vm14 = vmor %vm1869_vm13, %vm1870_vm12  ;;  %vm1879_vm1 = vweird.f32 %v3415_v27 }
 0x36f   :  { %v1862_v38 = vsel %vm1861_vm10, %v2590_v62, %v1858_v51  ;;  %v1865_v56 = vmul.f32 %v2594_v44, %v1864_v53  ;;  %v1699_v59 = vsel %vm1614_vm5, %v1610_v18, 0.0  ;;  %v2600_v0 = vpop.eup %2599  ;;  %v1479_v24 = vmul.f32 0.6931472, %v2598_v21 }
 0x370   :  { %v2074_v10 = vmul.f32 %v1862_v38, %v3126_v20  ;;  %1700 = vadd.xlane.f32.xlu1 %v1699_v59  ;;  %2603 = vlog2.f32 %v1435_v61  ;;  %v1436_v15 = vadd.f32 1.0, %v2600_v0  ;;  %v1343_v51 = vmin.f32 %v3174_v28, 20.0 }
 0x371   :  { %v1866_v54 = vmul.f32 0.5, %v1865_v56  ;;  %2605 = vpow2.f32 %v1388_v63  ;;  %v1530_v12 = vsel %vm1306_vm15, %v3133_v30, %v1479_v24  ;;  %v1344_v24 = vmin.f32 %v3194_v60, 20.0 }
 0x372   :  { %v2106_v1 = vsel %vm1293_vm4, %v1529_v23, %v2074_v10  ;;  %v1392_v63 = vmul.f32 1.442695, %v1343_v51  ;;  %vm1309_vm13 = vcmp.gt.f32.partialorder %v3158_v58, 20.0 }
 0x373   :  { %2138 = vst.msk [vmem:[%s3681_s6 + $0x58] sm:$0xff] %vm1614_vm5, %v2106_v1  ;;  %v1867_v2 = vsub.f32 1.5, %v1866_v54  ;;  %v1659_v55 = vpop.xlane.xlu2 %1658  ;;  %v3435_v5 = vpop.f32.mrf.mxu0  ;;  %v1394_v25 = vmul.f32 1.442695, %v1344_v24 }
 0x374   :  { %v2602_v8 = vpop.eup %2601  ;;  %v3437_v20 = vmax.f32 %v1659_v55, 1e-12  ;;  %v1579_v62 = vmul.f32 %v3435_v5, %v3435_v5 }
 0x375   :  { %v1868_v4 = vmul.f32 %v2594_v44, %v1867_v2  ;;  %v1874_v29 = vmul.f32 %v2602_v8, %v3415_v27  ;;  %vm1880_vm0 = vweird.f32 %v2602_v8 }
 0x376   :  { %2607 = vrsqrt.f32 %v3437_v20  ;;  %v1611_v57 = vsel %vm1293_vm4, 0.0, %v1579_v62  ;;  %v2604_v32 = vpop.eup %2603  ;;  %vm1881_vm2 = vmor %vm1879_vm1, %vm1880_vm0  ;;  %vm1889_vm7 = vweird.f32 %v3437_v20  ;;  %vm1310_vm1 = vcmp.gt.f32.partialorder %v3166_v3, 20.0 }
 0x377   :  { %v1872_v16 = vsel %vm1871_vm14, %v2594_v44, %v1868_v4  ;;  %v1875_v33 = vmul.f32 %v2602_v8, %v1874_v29  ;;  %v1702_v31 = vsel %vm1614_vm5, %v1611_v57, 0.0  ;;  %v2606_v7 = vpop.eup %2605  ;;  %2609 = vlog2.f32 %v1436_v15 }
 0x378   :  { %v2075_v14 = vmul.f32 %v1872_v16, %v3133_v30  ;;  %1703 = vadd.xlane.f32.xlu2 %v1702_v31  ;;  %v1481_v30 = vmul.f32 0.6931472, %v2604_v32  ;;  %v1437_v26 = vadd.f32 1.0, %v2606_v7 }
 0x379   :  { %v1876_v39 = vmul.f32 0.5, %v1875_v33 }
 0x37a   :  { %v2107_v40 = vsel %vm1293_vm4, %v1530_v12, %v2075_v14  ;;  %v1531_v38 = vsel %vm1307_vm3, %v3141_v37, %v1481_v30 }
 0x37b   :  { %2139 = vst.msk [vmem:[%s3681_s6 + $0x60] sm:$0xff] %vm1614_vm5, %v2107_v40  ;;  %v1877_v36 = vsub.f32 1.5, %v1876_v39  ;;  %v1662_v41 = vpop.xlane.xlu0 %1661 }
 0x37c   :  { %v2608_v46 = vpop.eup %2607  ;;  %v3457_v35 = vmax.f32 %v1662_v41, 1e-12 }
 0x37d   :  { %v1878_v44 = vmul.f32 %v2602_v8, %v1877_v36  ;;  %v1884_v45 = vmul.f32 %v2608_v46, %v3437_v20  ;;  %v2610_v18 = vpop.eup %2609  ;;  %vm1890_vm6 = vweird.f32 %v2608_v46 }
 0x37e   :  { %2611 = vrsqrt.f32 %v3457_v35  ;;  %vm1891_vm8 = vmor %vm1889_vm7, %vm1890_vm6  ;;  %vm1899_vm11 = vweird.f32 %v3457_v35  ;;  %vm1311_vm7 = vcmp.gt.f32.partialorder %v3174_v28, 20.0 }
 0x37f   :  { %v1882_v48 = vsel %vm1881_vm2, %v2602_v8, %v1878_v44  ;;  %v1885_v34 = vmul.f32 %v2608_v46, %v1884_v45  ;;  %2613 = vpow2.f32 %v1390_v42  ;;  %v1345_v42 = vmin.f32 %v3215_v22, 20.0 }
 0x380   :  { %v2076_v53 = vmul.f32 %v1882_v48, %v3141_v37  ;;  %2615 = vlog2.f32 %v1437_v26  ;;  %v1483_v37 = vmul.f32 0.6931472, %v2610_v18 }
 0x381   :  { %v1886_v56 = vmul.f32 0.5, %v1885_v34  ;;  %v3466_v27 = vpop.f32.mrf.mxu2  ;;  %v1396_v18 = vmul.f32 1.442695, %v1345_v42 }
 0x382   :  { %v2108_v59 = vsel %vm1293_vm4, %v1531_v38, %v2076_v53  ;;  %v1580_v21 = vmul.f32 %v3466_v27, %v3466_v27  ;;  %v1532_v57 = vsel %vm1308_vm9, %v3149_v50, %v1483_v37 }
 0x383   :  { %2140 = vst.msk [vmem:[%s3681_s6 + $0x68] sm:$0xff] %vm1614_vm5, %v2108_v59  ;;  %v1887_v61 = vsub.f32 1.5, %v1886_v56  ;;  %v1665_v10 = vpop.xlane.xlu1 %1664 }
 0x384   :  { %v2612_v23 = vpop.eup %2611  ;;  %v3476_v54 = vmax.f32 %v1665_v10, 1e-12  ;;  %v1612_v2 = vsel %vm1293_vm4, 0.0, %v1580_v21 }
 0x385   :  { %v1888_v0 = vmul.f32 %v2608_v46, %v1887_v61  ;;  %v1894_v1 = vmul.f32 %v2612_v23, %v3457_v35  ;;  %v2614_v55 = vpop.eup %2613  ;;  %v1705_v8 = vsel %vm1614_vm5, %v1612_v2, 0.0  ;;  %vm1900_vm10 = vweird.f32 %v2612_v23 }
 0x386   :  { %2617 = vrsqrt.f32 %v3476_v54  ;;  %1706 = vadd.xlane.f32.xlu0 %v1705_v8  ;;  %v2616_v29 = vpop.eup %2615  ;;  %v1438_v15 = vadd.f32 1.0, %v2614_v55  ;;  %vm1901_vm12 = vmor %vm1899_vm11, %vm1900_vm10  ;;  %vm1909_vm15 = vweird.f32 %v3476_v54  ;;  %vm1312_vm11 = vcmp.gt.f32.partialorder %v3194_v60, 20.0 }
 0x387   :  { %v1892_v62 = vsel %vm1891_vm8, %v2608_v46, %v1888_v0  ;;  %v1895_v4 = vmul.f32 %v2612_v23, %v1894_v1  ;;  %2619 = vpow2.f32 %v1392_v63 }
 0x388   :  { %v2077_v20 = vmul.f32 %v1892_v62, %v3149_v50  ;;  %v1485_v50 = vmul.f32 0.6931472, %v2616_v29  ;;  %2621 = vlog2.f32 %v1438_v15 }
 0x389   :  { %v1896_v16 = vmul.f32 0.5, %v1895_v4  ;;  %v3488_v33 = vpop.f32.mrf.mxu2  ;;  %2623 = vpow2.f32 %v1394_v25 }
 0x38a   :  { %v2109_v31 = vsel %vm1293_vm4, %v1532_v57, %v2077_v20  ;;  %v1581_v39 = vmul.f32 %v3488_v33, %v3488_v33  ;;  %v1533_v35 = vsel %vm1309_vm13, %v3158_v58, %v1485_v50 }
 0x38b   :  { %2141 = vst.msk [vmem:[%s3681_s6 + $0x70] sm:$0xff] %vm1614_vm5, %v2109_v31  ;;  %v1897_v14 = vsub.f32 1.5, %v1896_v16  ;;  %v1668_v12 = vpop.xlane.xlu2 %1667  ;;  %v1347_v31 = vmin.f32 %v3259_v17, 20.0 }
 0x38c   :  { %v3498_v32 = vmax.f32 %v1668_v12, 1e-12  ;;  %v2618_v40 = vpop.eup %2617  ;;  %v1613_v36 = vsel %vm1293_vm4, 0.0, %v1581_v39 }
 0x38d   :  { %v1898_v7 = vmul.f32 %v2612_v23, %v1897_v14  ;;  %v2620_v41 = vpop.eup %2619  ;;  %v1904_v46 = vmul.f32 %v2618_v40, %v3476_v54  ;;  %v1708_v44 = vsel %vm1614_vm5, %v1613_v36, 0.0  ;;  %vm1910_vm14 = vweird.f32 %v2618_v40 }
 0x38e   :  { %2625 = vrsqrt.f32 %v3498_v32  ;;  %1709 = vadd.xlane.f32.xlu1 %v1708_v44  ;;  %v1439_v48 = vadd.f32 1.0, %v2620_v41  ;;  %v2622_v53 = vpop.eup %2621  ;;  %vm1911_vm0 = vmor %vm1909_vm15, %vm1910_vm14  ;;  %vm1919_vm3 = vweird.f32 %v3498_v32  ;;  %vm1313_vm15 = vcmp.gt.f32.partialorder %v3215_v22, 20.0 }
 0x38f   :  { %v1902_v30 = vsel %vm1901_vm12, %v2612_v23, %v1898_v7  ;;  %v1905_v26 = vmul.f32 %v2618_v40, %v1904_v46  ;;  %v2624_v61 = vpop.eup %2623  ;;  %v1487_v21 = vmul.f32 0.6931472, %v2622_v53  ;;  %v1400_v46 = vmul.f32 1.442695, %v1347_v31 }
 0x390   :  { %v2078_v45 = vmul.f32 %v1902_v30, %v3158_v58  ;;  %2627 = vlog2.f32 %v1439_v48  ;;  %v1346_v58 = vmin.f32 %v3237_v19, 20.0  ;;  %v1440_v63 = vadd.f32 1.0, %v2624_v61 }
 0x391   :  { %v1906_v51 = vmul.f32 0.5, %v1905_v26  ;;  %v1534_v8 = vsel %vm1310_vm1, %v3166_v3, %v1487_v21 }
 0x392   :  { %v2110_v34 = vsel %vm1293_vm4, %v1533_v35, %v2078_v45  ;;  %v1398_v1 = vmul.f32 1.442695, %v1346_v58 }
 0x393   :  { %2142 = vst.msk [vmem:[%s3681_s6 + $0x78] sm:$0xff] %vm1614_vm5, %v2110_v34  ;;  %v1671_v38 = vpop.xlane.xlu0 %1670  ;;  %v1907_v56 = vsub.f32 1.5, %v1906_v51 }
 0x394   :  { %v1729_v59 = vmax.f32 %v1671_v38, 1e-12  ;;  %v2626_v10 = vpop.eup %2625 }
 0x395   :  { %v1908_v23 = vmul.f32 %v2618_v40, %v1907_v56  ;;  %v1914_v37 = vmul.f32 %v2626_v10, %v3498_v32  ;;  %vm1920_vm2 = vweird.f32 %v2626_v10 }
 0x396   :  { %2629 = vrsqrt.f32 %v1729_v59  ;;  %v2628_v24 = vpop.eup %2627  ;;  %vm1921_vm6 = vmor %vm1919_vm3, %vm1920_vm2  ;;  %vm1929_vm9 = vweird.f32 %v1729_v59  ;;  %vm1314_vm3 = vcmp.gt.f32.partialorder %v3237_v19, 20.0 }
 0x397   :  { %2631 = vpow2.f32 %v1396_v18  ;;  %v1912_v0 = vsel %vm1911_vm0, %v2618_v40, %v1908_v23  ;;  %v1915_v55 = vmul.f32 %v2626_v10, %v1914_v37 }
 0x398   :  { %v2079_v2 = vmul.f32 %v1912_v0, %v3166_v3  ;;  %2633 = vlog2.f32 %v1440_v63  ;;  %v1489_v3 = vmul.f32 0.6931472, %v2628_v24 }
 0x399   :  { %v1916_v54 = vmul.f32 0.5, %v1915_v55  ;;  %2635 = vpow2.f32 %v1398_v1 }
 0x39a   :  { %v2111_v62 = vsel %vm1293_vm4, %v1534_v8, %v2079_v2  ;;  %v1535_v41 = vsel %vm1311_vm7, %v3174_v28, %v1489_v3  ;;  %v1349_v2 = vmin.f32 %v3303_v13, 20.0 }
 0x39b   :  { %v1674_v4 = vpop.xlane.xlu1 %1673  ;;  %2143 = vst.msk [vmem:[%s3681_s6 + $0x80] sm:$0xff] %vm1614_vm5, %v2111_v62  ;;  %v1917_v15 = vsub.f32 1.5, %v1916_v54 }
 0x39c   :  { %v2630_v20 = vpop.eup %2629  ;;  %v1730_v29 = vmax.f32 %v1674_v4, 1e-12 }
 0x39d   :  { %v2632_v57 = vpop.eup %2631  ;;  %v1924_v16 = vmul.f32 %v2630_v20, %v1729_v59  ;;  %v1918_v25 = vmul.f32 %v2626_v10, %v1917_v15  ;;  %vm1930_vm8 = vweird.f32 %v2630_v20 }
 0x39e   :  { %2637 = vrsqrt.f32 %v1730_v29  ;;  %v1441_v12 = vadd.f32 1.0, %v2632_v57  ;;  %v2634_v40 = vpop.eup %2633  ;;  %vm1931_vm10 = vmor %vm1929_vm9, %vm1930_vm8  ;;  %vm1939_vm13 = vweird.f32 %v1730_v29  ;;  %v1404_v57 = vmul.f32 1.442695, %v1349_v2 }
 0x39f   :  { %v1925_v14 = vmul.f32 %v2630_v20, %v1924_v16  ;;  %v1922_v39 = vsel %vm1921_vm6, %v2626_v10, %v1918_v25  ;;  %v2636_v36 = vpop.eup %2635  ;;  %v1491_v26 = vmul.f32 0.6931472, %v2634_v40  ;;  %vm1315_vm9 = vcmp.gt.f32.partialorder %v3259_v17, 20.0 }
 0x3a0   :  { %v2080_v7 = vmul.f32 %v1922_v39, %v3174_v28  ;;  %2639 = vlog2.f32 %v1441_v12  ;;  %v1348_v28 = vmin.f32 %v3281_v52, 20.0  ;;  %v1442_v53 = vadd.f32 1.0, %v2636_v36 }
 0x3a1   :  { %v1926_v50 = vmul.f32 0.5, %v1925_v14  ;;  %v1536_v38 = vsel %vm1312_vm11, %v3194_v60, %v1491_v26  ;;  %v1350_v39 = vmin.f32 %v3325_v49, 20.0 }
 0x3a2   :  { %v2112_v32 = vsel %vm1293_vm4, %v1535_v41, %v2080_v7  ;;  %v1402_v58 = vmul.f32 1.442695, %v1348_v28 }
 0x3a3   :  { %v1927_v42 = vsub.f32 1.5, %v1926_v50  ;;  %v1677_v30 = vpop.xlane.xlu2 %1676  ;;  %2144 = vst.msk [vmem:[%s3681_s6 + $0x88] sm:$0xff] %vm1614_vm5, %v2112_v32 }
 0x3a4   :  { %v2638_v44 = vpop.eup %2637  ;;  %v1731_v45 = vmax.f32 %v1677_v30, 1e-12 }
 0x3a5   :  { %v1928_v35 = vmul.f32 %v2630_v20, %v1927_v42  ;;  %v1934_v48 = vmul.f32 %v2638_v44, %v1730_v29  ;;  %vm1940_vm12 = vweird.f32 %v2638_v44 }
 0x3a6   :  { %2641 = vrsqrt.f32 %v1731_v45  ;;  %v2640_v61 = vpop.eup %2639  ;;  %vm1941_vm14 = vmor %vm1939_vm13, %vm1940_vm12  ;;  %vm1949_vm1 = vweird.f32 %v1731_v45  ;;  %vm1316_vm13 = vcmp.gt.f32.partialorder %v3281_v52, 20.0 }
 0x3a7   :  { %2643 = vpow2.f32 %v1400_v46  ;;  %v1932_v34 = vsel %vm1931_vm10, %v2630_v20, %v1928_v35  ;;  %v1935_v51 = vmul.f32 %v2638_v44, %v1934_v48  ;;  %v1493_v0 = vmul.f32 0.6931472, %v2640_v61 }
 0x3a8   :  { %v2081_v18 = vmul.f32 %v1932_v34, %v3194_v60  ;;  %2645 = vlog2.f32 %v1442_v53 }
 0x3a9   :  { %v1936_v56 = vmul.f32 0.5, %v1935_v51  ;;  %v1537_v54 = vsel %vm1313_vm15, %v3215_v22, %v1493_v0  ;;  %v1351_v51 = vmin.f32 %v3347_v11, 20.0 }
 0x3aa   :  { %v2113_v59 = vsel %vm1293_vm4, %v1536_v38, %v2081_v18 }
 0x3ab   :  { %2145 = vst.msk [vmem:[%s3681_s6 + $0x90] sm:$0xff] %vm1614_vm5, %v2113_v59  ;;  %v1937_v10 = vsub.f32 1.5, %v1936_v56  ;;  %v1680_v21 = vpop.xlane.xlu0 %1679 }
 0x3ac   :  { %v2642_v23 = vpop.eup %2641  ;;  %v1732_v37 = vmax.f32 %v1680_v21, 1e-12  ;;  %v1408_v21 = vmul.f32 1.442695, %v1351_v51 }
 0x3ad   :  { %v2644_v63 = vpop.eup %2643  ;;  %v1938_v60 = vmul.f32 %v2638_v44, %v1937_v10  ;;  %v1944_v1 = vmul.f32 %v2642_v23, %v1731_v45  ;;  %vm1950_vm0 = vweird.f32 %v2642_v23 }
 0x3ae   :  { %2647 = vrsqrt.f32 %v1732_v37  ;;  %v1443_v24 = vadd.f32 1.0, %v2644_v63  ;;  %v2646_v20 = vpop.eup %2645  ;;  %vm1951_vm2 = vmor %vm1949_vm1, %vm1950_vm0  ;;  %vm1959_vm7 = vweird.f32 %v1732_v37  ;;  %vm1317_vm1 = vcmp.gt.f32.partialorder %v3303_v13, 20.0 }
 0x3af   :  { %2649 = vpow2.f32 %v1402_v58  ;;  %v1942_v55 = vsel %vm1941_vm14, %v2638_v44, %v1938_v60  ;;  %v1945_v8 = vmul.f32 %v2642_v23, %v1944_v1  ;;  %v1495_v14 = vmul.f32 0.6931472, %v2646_v20 }
 0x3b0   :  { %v2082_v62 = vmul.f32 %v1942_v55, %v3215_v22  ;;  %2651 = vlog2.f32 %v1443_v24  ;;  %v1406_v44 = vmul.f32 1.442695, %v1350_v39  ;;  %v1352_v55 = vmin.f32 %v3369_v47, 20.0 }
 0x3b1   :  { %v1946_v4 = vmul.f32 0.5, %v1945_v8  ;;  %v1538_v41 = vsel %vm1314_vm3, %v3237_v19, %v1495_v14  ;;  %v1353_v39 = vmin.f32 %v3391_v9, 20.0 }
 0x3b2   :  { %v2114_v29 = vsel %vm1293_vm4, %v1537_v54, %v2082_v62 }
 0x3b3   :  { %2146 = vst.msk [vmem:[%s3681_s6 + $0x98] sm:$0xff] %vm1614_vm5, %v2114_v29  ;;  %v1947_v15 = vsub.f32 1.5, %v1946_v4  ;;  %v1683_v16 = vpop.xlane.xlu1 %1682 }
 0x3b4   :  { %v2648_v3 = vpop.eup %2647  ;;  %v1733_v31 = vmax.f32 %v1683_v16, 1e-12 }
 0x3b5   :  { %v2650_v25 = vpop.eup %2649  ;;  %v1948_v22 = vmul.f32 %v2642_v23, %v1947_v15  ;;  %v1954_v12 = vmul.f32 %v2648_v3, %v1732_v37  ;;  %vm1960_vm6 = vweird.f32 %v2648_v3  ;;  %v1410_v15 = vmul.f32 1.442695, %v1352_v55 }
 0x3b6   :  { %2653 = vrsqrt.f32 %v1733_v31  ;;  %v1444_v7 = vadd.f32 1.0, %v2650_v25  ;;  %v2652_v42 = vpop.eup %2651  ;;  %vm1961_vm8 = vmor %vm1959_vm7, %vm1960_vm6  ;;  %vm1969_vm11 = vweird.f32 %v1733_v31  ;;  %vm1318_vm7 = vcmp.gt.f32.partialorder %v3325_v49, 20.0 }
 0x3b7   :  { %2655 = vpow2.f32 %v1404_v57  ;;  %v1952_v50 = vsel %vm1951_vm2, %v2642_v23, %v1948_v22  ;;  %v1955_v40 = vmul.f32 %v2648_v3, %v1954_v12  ;;  %v1497_v28 = vmul.f32 0.6931472, %v2652_v42 }
 0x3b8   :  { %v2083_v36 = vmul.f32 %v1952_v50, %v3237_v19  ;;  %2657 = vlog2.f32 %v1444_v7 }
 0x3b9   :  { %v1956_v46 = vmul.f32 0.5, %v1955_v40  ;;  %v1539_v61 = vsel %vm1315_vm9, %v3259_v17, %v1497_v28 }
 0x3ba   :  { %v2115_v30 = vsel %vm1293_vm4, %v1538_v41, %v2083_v36 }
 0x3bb   :  { %2147 = vst.msk [vmem:[%s3681_s6 + $0xa0] sm:$0xff] %vm1614_vm5, %v2115_v30  ;;  %v1957_v32 = vsub.f32 1.5, %v1956_v46  ;;  %v1686_v45 = vpop.xlane.xlu2 %1685 }
 0x3bc   :  { %v2654_v26 = vpop.eup %2653  ;;  %v1734_v35 = vmax.f32 %v1686_v45, 1e-12 }
 0x3bd   :  { %v2656_v48 = vpop.eup %2655  ;;  %v1958_v19 = vmul.f32 %v2648_v3, %v1957_v32  ;;  %v1964_v34 = vmul.f32 %v2654_v26, %v1733_v31  ;;  %vm1970_vm10 = vweird.f32 %v2654_v26 }
 0x3be   :  { %2659 = vrsqrt.f32 %v1734_v35  ;;  %v1445_v38 = vadd.f32 1.0, %v2656_v48  ;;  %v2658_v58 = vpop.eup %2657  ;;  %vm1971_vm12 = vmor %vm1969_vm11, %vm1970_vm10  ;;  %vm1979_vm15 = vweird.f32 %v1734_v35  ;;  %vm1319_vm11 = vcmp.gt.f32.partialorder %v3347_v11, 20.0 }
 0x3bf   :  { %2661 = vpow2.f32 %v1406_v44  ;;  %v1962_v53 = vsel %vm1961_vm8, %v2648_v3, %v1958_v19  ;;  %v1965_v18 = vmul.f32 %v2654_v26, %v1964_v34  ;;  %v1499_v1 = vmul.f32 0.6931472, %v2658_v58 }
 0x3c0   :  { %v2084_v56 = vmul.f32 %v1962_v53, %v3259_v17  ;;  %2663 = vlog2.f32 %v1445_v38  ;;  %v1412_v44 = vmul.f32 1.442695, %v1353_v39  ;;  %v1354_v34 = vmin.f32 %v3413_v43, 20.0 }
 0x3c1   :  { %v1966_v59 = vmul.f32 0.5, %v1965_v18  ;;  %v1540_v4 = vsel %vm1316_vm13, %v3281_v52, %v1499_v1 }
 0x3c2   :  { %v2116_v10 = vsel %vm1293_vm4, %v1539_v61, %v2084_v56 }
 0x3c3   :  { %2148 = vst.msk [vmem:[%s3681_s6 + $0xa8] sm:$0xff] %vm1614_vm5, %v2116_v10  ;;  %v1967_v23 = vsub.f32 1.5, %v1966_v59  ;;  %v1689_v37 = vpop.xlane.xlu0 %1688  ;;  %v1414_v10 = vmul.f32 1.442695, %v1354_v34 }
 0x3c4   :  { %v2660_v63 = vpop.eup %2659  ;;  %v1735_v0 = vmax.f32 %v1689_v37, 1e-12 }
 0x3c5   :  { %v2662_v60 = vpop.eup %2661  ;;  %v1968_v17 = vmul.f32 %v2654_v26, %v1967_v23  ;;  %v1974_v2 = vmul.f32 %v2660_v63, %v1734_v35  ;;  %vm1980_vm14 = vweird.f32 %v2660_v63 }
 0x3c6   :  { %2665 = vrsqrt.f32 %v1735_v0  ;;  %v1446_v62 = vadd.f32 1.0, %v2662_v60  ;;  %v2664_v29 = vpop.eup %2663  ;;  %vm1981_vm0 = vmor %vm1979_vm15, %vm1980_vm14  ;;  %vm1989_vm3 = vweird.f32 %v1735_v0  ;;  %vm1320_vm15 = vcmp.gt.f32.partialorder %v3369_v47, 20.0 }
 0x3c7   :  { %2667 = vpow2.f32 %v1408_v21  ;;  %v1972_v8 = vsel %vm1971_vm12, %v2654_v26, %v1968_v17  ;;  %v1975_v24 = vmul.f32 %v2660_v63, %v1974_v2  ;;  %v1501_v22 = vmul.f32 0.6931472, %v2664_v29 }
 0x3c8   :  { %v2085_v54 = vmul.f32 %v1972_v8, %v3281_v52  ;;  %2669 = vlog2.f32 %v1446_v62  ;;  %v1355_v17 = vmin.f32 %v3435_v5, 20.0 }
 0x3c9   :  { %v1976_v20 = vmul.f32 0.5, %v1975_v24  ;;  %v1541_v41 = vsel %vm1317_vm1, %v3303_v13, %v1501_v22 }
 0x3ca   :  { %v2117_v57 = vsel %vm1293_vm4, %v1540_v4, %v2085_v54  ;;  %v1416_v29 = vmul.f32 1.442695, %v1355_v17 }
 0x3cb   :  { %2149 = vst.msk [vmem:[%s3681_s6 + $0xb0] sm:$0xff] %vm1614_vm5, %v2117_v57  ;;  %v1977_v16 = vsub.f32 1.5, %v1976_v20  ;;  %v1692_v3 = vpop.xlane.xlu1 %1691 }
 0x3cc   :  { %v2666_v31 = vpop.eup %2665  ;;  %v1736_v25 = vmax.f32 %v1692_v3, 1e-12 }
 0x3cd   :  { %v2668_v14 = vpop.eup %2667  ;;  %v1978_v52 = vmul.f32 %v2660_v63, %v1977_v16  ;;  %v1984_v12 = vmul.f32 %v2666_v31, %v1735_v0  ;;  %vm1990_vm2 = vweird.f32 %v2666_v31 }
 0x3ce   :  { %2671 = vrsqrt.f32 %v1736_v25  ;;  %v1447_v7 = vadd.f32 1.0, %v2668_v14  ;;  %v2670_v42 = vpop.eup %2669  ;;  %vm1991_vm6 = vmor %vm1989_vm3, %vm1990_vm2  ;;  %vm1999_vm9 = vweird.f32 %v1736_v25  ;;  %vm1321_vm3 = vcmp.gt.f32.partialorder %v3391_v9, 20.0 }
 0x3cf   :  { %2673 = vpow2.f32 %v1410_v15  ;;  %v1982_v50 = vsel %vm1981_vm0, %v2660_v63, %v1978_v52  ;;  %v1985_v40 = vmul.f32 %v2666_v31, %v1984_v12  ;;  %v1503_v28 = vmul.f32 0.6931472, %v2670_v42 }
 0x3d0   :  { %v2086_v36 = vmul.f32 %v1982_v50, %v3303_v13  ;;  %2675 = vlog2.f32 %v1447_v7 }
 0x3d1   :  { %v1986_v46 = vmul.f32 0.5, %v1985_v40  ;;  %v1542_v56 = vsel %vm1318_vm7, %v3325_v49, %v1503_v28 }
 0x3d2   :  { %v2118_v30 = vsel %vm1293_vm4, %v1541_v41, %v2086_v36 }
 0x3d3   :  { %2150 = vst.msk [vmem:[%s3681_s6 + $0xb8] sm:$0xff] %vm1614_vm5, %v2118_v30  ;;  %v1987_v32 = vsub.f32 1.5, %v1986_v46  ;;  %v1695_v45 = vpop.xlane.xlu2 %1694 }
 0x3d4   :  { %v2672_v26 = vpop.eup %2671  ;;  %v1737_v35 = vmax.f32 %v1695_v45, 1e-12 }
 0x3d5   :  { %v2674_v48 = vpop.eup %2673  ;;  %v1988_v13 = vmul.f32 %v2666_v31, %v1987_v32  ;;  %v1994_v19 = vmul.f32 %v2672_v26, %v1736_v25  ;;  %vm2000_vm8 = vweird.f32 %v2672_v26 }
 0x3d6   :  { %2677 = vrsqrt.f32 %v1737_v35  ;;  %v1448_v18 = vadd.f32 1.0, %v2674_v48  ;;  %v2676_v59 = vpop.eup %2675  ;;  %vm2001_vm10 = vmor %vm1999_vm9, %vm2000_vm8  ;;  %vm2009_vm13 = vweird.f32 %v1737_v35  ;;  %vm1322_vm9 = vcmp.gt.f32.partialorder %v3413_v43, 20.0 }
 0x3d7   :  { %2679 = vpow2.f32 %v1412_v44  ;;  %v1992_v51 = vsel %vm1991_vm6, %v2666_v31, %v1988_v13  ;;  %v1995_v53 = vmul.f32 %v2672_v26, %v1994_v19  ;;  %v1505_v60 = vmul.f32 0.6931472, %v2676_v59 }
 0x3d8   :  { %v2087_v38 = vmul.f32 %v1992_v51, %v3325_v49  ;;  %2681 = vlog2.f32 %v1448_v18 }
 0x3d9   :  { %v1996_v61 = vmul.f32 0.5, %v1995_v53  ;;  %v1543_v62 = vsel %vm1319_vm11, %v3347_v11, %v1505_v60 }
 0x3da   :  { %v2119_v58 = vsel %vm1293_vm4, %v1542_v56, %v2087_v38 }
 0x3db   :  { %2151 = vst.msk [vmem:[%s3681_s6 + $0xc0] sm:$0xff] %vm1614_vm5, %v2119_v58  ;;  %v1997_v21 = vsub.f32 1.5, %v1996_v61  ;;  %v1698_v23 = vpop.xlane.xlu0 %1697 }
 0x3dc   :  { %v2678_v37 = vpop.eup %2677  ;;  %v1738_v63 = vmax.f32 %v1698_v23, 1e-12 }
 0x3dd   :  { %v2680_v0 = vpop.eup %2679  ;;  %v1998_v49 = vmul.f32 %v2672_v26, %v1997_v21  ;;  %v2004_v1 = vmul.f32 %v2678_v37, %v1737_v35  ;;  %vm2010_vm12 = vweird.f32 %v2678_v37 }
 0x3de   :  { %2683 = vrsqrt.f32 %v1738_v63  ;;  %v1449_v8 = vadd.f32 1.0, %v2680_v0  ;;  %v2682_v4 = vpop.eup %2681  ;;  %vm2011_vm14 = vmor %vm2009_vm13, %vm2010_vm12  ;;  %vm2019_vm1 = vweird.f32 %v1738_v63  ;;  %vm1323_vm13 = vcmp.gt.f32.partialorder %v3435_v5, 20.0 }
 0x3df   :  { %2685 = vpow2.f32 %v1414_v10  ;;  %v2002_v2 = vsel %vm2001_vm10, %v2672_v26, %v1998_v49  ;;  %v2005_v55 = vmul.f32 %v2678_v37, %v2004_v1  ;;  %v1507_v25 = vmul.f32 0.6931472, %v2682_v4 }
 0x3e0   :  { %v2088_v24 = vmul.f32 %v2002_v2, %v3347_v11  ;;  %2687 = vlog2.f32 %v1449_v8  ;;  %v1356_v26 = vmin.f32 %v3466_v27, 20.0 }
 0x3e1   :  { %v2006_v54 = vmul.f32 0.5, %v2005_v55  ;;  %v1544_v50 = vsel %vm1320_vm15, %v3369_v47, %v1507_v25 }
 0x3e2   :  { %v2120_v20 = vsel %vm1293_vm4, %v1543_v62, %v2088_v24  ;;  %v1418_v53 = vmul.f32 1.442695, %v1356_v26 }
 0x3e3   :  { %2152 = vst.msk [vmem:[%s3681_s6 + $0xc8] sm:$0xff] %vm1614_vm5, %v2120_v20  ;;  %v2007_v57 = vsub.f32 1.5, %v2006_v54  ;;  %v1701_v15 = vpop.xlane.xlu1 %1700 }
 0x3e4   :  { %v2684_v16 = vpop.eup %2683  ;;  %v1739_v3 = vmax.f32 %v1701_v15, 1e-12 }
 0x3e5   :  { %v2686_v31 = vpop.eup %2685  ;;  %v2008_v11 = vmul.f32 %v2678_v37, %v2007_v57  ;;  %v2014_v14 = vmul.f32 %v2684_v16, %v1738_v63  ;;  %vm2020_vm0 = vweird.f32 %v2684_v16 }
 0x3e6   :  { %2689 = vrsqrt.f32 %v1739_v3  ;;  %v1450_v12 = vadd.f32 1.0, %v2686_v31  ;;  %v2688_v7 = vpop.eup %2687  ;;  %vm2021_vm2 = vmor %vm2019_vm1, %vm2020_vm0  ;;  %vm2029_vm7 = vweird.f32 %v1739_v3  ;;  %vm1324_vm1 = vcmp.gt.f32.partialorder %v3466_v27, 20.0 }
 0x3e7   :  { %2691 = vpow2.f32 %v1416_v29  ;;  %v2012_v22 = vsel %vm2011_vm14, %v2678_v37, %v2008_v11  ;;  %v2015_v52 = vmul.f32 %v2684_v16, %v2014_v14  ;;  %v1509_v32 = vmul.f32 0.6931472, %v2688_v7 }
 0x3e8   :  { %v2089_v39 = vmul.f32 %v2012_v22, %v3369_v47  ;;  %2693 = vlog2.f32 %v1450_v12 }
 0x3e9   :  { %v2016_v40 = vmul.f32 0.5, %v2015_v52  ;;  %v1545_v19 = vsel %vm1321_vm3, %v3391_v9, %v1509_v32 }
 0x3ea   :  { %v2121_v36 = vsel %vm1293_vm4, %v1544_v50, %v2089_v39 }
 0x3eb   :  { %2153 = vst.msk [vmem:[%s3681_s6 + $0xd0] sm:$0xff] %vm1614_vm5, %v2121_v36  ;;  %v2017_v41 = vsub.f32 1.5, %v2016_v40  ;;  %v1704_v46 = vpop.xlane.xlu2 %1703 }
 0x3ec   :  { %v2690_v42 = vpop.eup %2689  ;;  %v1740_v30 = vmax.f32 %v1704_v46, 1e-12 }
 0x3ed   :  { %v2692_v44 = vpop.eup %2691  ;;  %v2018_v45 = vmul.f32 %v2684_v16, %v2017_v41  ;;  %v2024_v47 = vmul.f32 %v2690_v42, %v1739_v3  ;;  %vm2030_vm6 = vweird.f32 %v2690_v42 }
 0x3ee   :  { %2695 = vrsqrt.f32 %v1740_v30  ;;  %v1451_v28 = vadd.f32 1.0, %v2692_v44  ;;  %v2694_v51 = vpop.eup %2693  ;;  %vm2031_vm8 = vmor %vm2029_vm7, %vm2030_vm6  ;;  %vm2039_vm11 = vweird.f32 %v1740_v30  ;;  %vm1325_vm7 = vcmp.gt.f32.partialorder %v3488_v33, 20.0 }
 0x3ef   :  { %v2022_v35 = vsel %vm2021_vm2, %v2684_v16, %v2018_v45  ;;  %v2025_v48 = vmul.f32 %v2690_v42, %v2024_v47  ;;  %v1511_v61 = vmul.f32 0.6931472, %v2694_v51 }
 0x3f0   :  { %v2090_v13 = vmul.f32 %v2022_v35, %v3391_v9  ;;  %2697 = vlog2.f32 %v1451_v28  ;;  %v1357_v9 = vmin.f32 %v3488_v33, 20.0 }
 0x3f1   :  { %v2026_v34 = vmul.f32 0.5, %v2025_v48  ;;  %2699 = vpow2.f32 %v1418_v53  ;;  %v1546_v37 = vsel %vm1322_vm9, %v3413_v43, %v1511_v61 }
 0x3f2   :  { %v2122_v18 = vsel %vm1293_vm4, %v1545_v19, %v2090_v13  ;;  %v1420_v1 = vmul.f32 1.442695, %v1357_v9 }
 0x3f3   :  { %2154 = vst.msk [vmem:[%s3681_s6 + $0xd8] sm:$0xff] %vm1614_vm5, %v2122_v18  ;;  %v2027_v38 = vsub.f32 1.5, %v2026_v34 }
 0x3f4   :  { %v2696_v56 = vpop.eup %2695 }
 0x3f5   :  { %v2028_v59 = vmul.f32 %v2690_v42, %v2027_v38  ;;  %v2034_v58 = vmul.f32 %v2696_v56, %v1740_v30  ;;  %vm2040_vm10 = vweird.f32 %v2696_v56 }
 0x3f6   :  { %v2698_v0 = vpop.eup %2697  ;;  %vm2041_vm12 = vmor %vm2039_vm11, %vm2040_vm10 }
 0x3f7   :  { %v2032_v10 = vsel %vm2031_vm8, %v2690_v42, %v2028_v59  ;;  %v2035_v21 = vmul.f32 %v2696_v56, %v2034_v58  ;;  %v2700_v55 = vpop.eup %2699  ;;  %v1513_v8 = vmul.f32 0.6931472, %v2698_v0 }
 0x3f8   :  { %v2091_v23 = vmul.f32 %v2032_v10, %v3413_v43  ;;  %v1452_v43 = vadd.f32 1.0, %v2700_v55 }
 0x3f9   :  { %v2036_v63 = vmul.f32 0.5, %v2035_v21  ;;  %v1707_v49 = vpop.xlane.xlu0 %1706  ;;  %v1547_v4 = vsel %vm1323_vm13, %v3435_v5, %v1513_v8 }
 0x3fa   :  { %v2123_v60 = vsel %vm1293_vm4, %v1546_v37, %v2091_v23  ;;  %v1741_v2 = vmax.f32 %v1707_v49, 1e-12 }
 0x3fb   :  { %2155 = vst.msk [vmem:[%s3681_s6 + $0xe0] sm:$0xff] %vm1614_vm5, %v2123_v60  ;;  %v2037_v17 = vsub.f32 1.5, %v2036_v63 }
 0x3fc   :  { %2701 = vrsqrt.f32 %v1741_v2  ;;  %vm2049_vm15 = vweird.f32 %v1741_v2 }
 0x3fd   :  { %v2038_v24 = vmul.f32 %v2696_v56, %v2037_v17  ;;  %2703 = vpow2.f32 %v1420_v1 }
 0x3fe   :  { %2705 = vlog2.f32 %v1452_v43 }
 0x3ff   :  { %v2042_v62 = vsel %vm2041_vm12, %v2696_v56, %v2038_v24 }
 0x400   :  { %v2092_v54 = vmul.f32 %v2042_v62, %v3435_v5 }
 0x401   :  { %v1710_v57 = vpop.xlane.xlu1 %1709 }
 0x402   :  { %v2124_v20 = vsel %vm1293_vm4, %v1547_v4, %v2092_v54  ;;  %v2702_v29 = vpop.eup %2701  ;;  %v1742_v16 = vmax.f32 %v1710_v57, 1e-12 }
 0x403   :  { %2156 = vst.msk [vmem:[%s3681_s6 + $0xe8] sm:$0xff] %vm1614_vm5, %v2124_v20  ;;  %v2044_v15 = vmul.f32 %v2702_v29, %v1741_v2  ;;  %v2704_v3 = vpop.eup %2703  ;;  %vm2050_vm14 = vweird.f32 %v2702_v29 }
 0x404   :  { %2707 = vrsqrt.f32 %v1742_v16  ;;  %v1453_v25 = vadd.f32 1.0, %v2704_v3  ;;  %v2706_v14 = vpop.eup %2705  ;;  %vm2051_vm0 = vmor %vm2049_vm15, %vm2050_vm14  ;;  %vm2059_vm3 = vweird.f32 %v1742_v16 }
 0x405   :  { %v2045_v31 = vmul.f32 %v2702_v29, %v2044_v15  ;;  %v1515_v52 = vmul.f32 0.6931472, %v2706_v14 }
 0x406   :  { %2709 = vlog2.f32 %v1453_v25 }
 0x407   :  { %v2046_v11 = vmul.f32 0.5, %v2045_v31  ;;  %v1548_v36 = vsel %vm1324_vm1, %v3466_v27, %v1515_v52 }
 0x409   :  { %v2047_v5 = vsub.f32 1.5, %v2046_v11 }
 0x40a   :  { %v2708_v22 = vpop.eup %2707 }
 0x40b   :  { %v2048_v12 = vmul.f32 %v2702_v29, %v2047_v5  ;;  %v2054_v39 = vmul.f32 %v2708_v22, %v1742_v16  ;;  %vm2060_vm2 = vweird.f32 %v2708_v22 }
 0x40c   :  { %v2710_v42 = vpop.eup %2709  ;;  %vm2061_vm6 = vmor %vm2059_vm3, %vm2060_vm2 }
 0x40d   :  { %v2052_v50 = vsel %vm2051_vm0, %v2702_v29, %v2048_v12  ;;  %v2055_v7 = vmul.f32 %v2708_v22, %v2054_v39  ;;  %v1517_v44 = vmul.f32 0.6931472, %v2710_v42 }
 0x40e   :  { %v2093_v40 = vmul.f32 %v2052_v50, %v3466_v27 }
 0x40f   :  { %v2056_v46 = vmul.f32 0.5, %v2055_v7  ;;  %v1549_v47 = vsel %vm1325_vm7, %v3488_v33, %v1517_v44 }
 0x410   :  { %v2125_v41 = vsel %vm1293_vm4, %v1548_v36, %v2093_v40 }
 0x411   :  { %2157 = vst.msk [vmem:[%s3681_s6 + $0xf0] sm:$0xff] %vm1614_vm5, %v2125_v41  ;;  %v2057_v30 = vsub.f32 1.5, %v2056_v46 }
 0x413   :  { %v2058_v32 = vmul.f32 %v2708_v22, %v2057_v30 }
 0x415   :  { %v2062_v45 = vsel %vm2061_vm6, %v2708_v22, %v2058_v32 }
 0x416   :  { %v2094_v27 = vmul.f32 %v2062_v45, %v3488_v33 }
 0x418   :  { %v2126_v26 = vsel %vm1293_vm4, %v1549_v47, %v2094_v27 }
 0x419   :  { %2158 = vst.msk [vmem:[%s3681_s6 + $0xf8] sm:$0xff] %vm1614_vm5, %v2126_v26 }
 0x41a   :  { %2163 = vsyncpa [#allocation3], 1 }
 0x41b   :  { %2164 = vsyncpa [#allocation5], 1 }

</bundles_post_ra>
